<compile_context>
chip_gen: v7x
topology: tpu7x:2x2x1
jax: 0.10.0
libtpu: 0.0.40
codegen_flags: <defaults>
</compile_context>

<pallas_src>
import functools
import math

import jax
import jax.numpy as jnp
from jax import lax
from jax.experimental import pallas as pl
from jax.experimental.pallas import tpu as pltpu


# Row indices of the packed (16, WB) bias / LayerNorm-parameter operand.
_ROW_TEXT_G, _ROW_TEXT_B = 0, 1
_ROW_VIS_G, _ROW_VIS_B = 2, 3
_ROW_MLP_G, _ROW_MLP_B = 4, 5
_ROW_GATE_B = 6
_ROW_FC1_B = 7
_ROW_FC2_B = 8
_NUM_BIAS_ROWS = 16


# --------------------------------- kernel ------------------------------------

def ret_cell_kernel(text_ref, vis_ref, actres_ref, a_ref, wvo_ref, gatew_ref,
                    fc1_ref, fc2_ref, bias_ref, out_ref,
                    *, lt, lv, lq, nh, use_tanh, activation_fn):
    hidden = out_ref.shape[-1]
    inter = fc1_ref.shape[1]
    tn = out_ref.shape[0] // lq
    nq = nh * lq

    def ln(x, grow):
        g = bias_ref[grow:grow + 1, 0:hidden]
        b = bias_ref[grow + 1:grow + 2, 0:hidden]
        mean = jnp.mean(x, axis=-1, keepdims=True)
        c = x - mean
        var = jnp.mean(c * c, axis=-1, keepdims=True)
        return c * lax.rsqrt(var + 1e-5) * g + b

    def modality(kv_ref, lk, grow, a_idx):
        # LayerNorm on the whole (tn*lk, H) slab (f32), then bf16 for the MXU.
        x = ln(kv_ref[...].astype(jnp.float32), grow).astype(jnp.bfloat16)
        # Scores for all heads/queries at once (queries folded into A).
        s = jnp.dot(x, a_ref[a_idx],
                    preferred_element_type=jnp.float32)          # (tn*lk, nq)
        s = jnp.swapaxes(s.reshape(tn, lk, nq), 1, 2)            # (tn, nq, lk)
        m = jnp.max(s, axis=-1, keepdims=True)
        e = jnp.exp(s - m)
        p = e * pl.reciprocal(jnp.sum(e, axis=-1, keepdims=True), approx=True)
        # Fused value + output projection, 128-lane-dense output.
        vo = jnp.dot(x, wvo_ref[a_idx],
                     preferred_element_type=jnp.float32)         # (tn*lk, nh*H)
        vo = vo.reshape(tn, lk, nh * hidden).astype(jnp.bfloat16)
        # One batched contraction over keys; heads stay packed on lanes.
        big = lax.dot_general(
            p.astype(jnp.bfloat16), vo,
            dimension_numbers=(((2,), (1,)), ((0,), (0,))),
            preferred_element_type=jnp.float32)                  # (tn,nq,nh*H)
        # Head-diagonal gather: sum over per-head blocks (cheap VPU work).
        acc = big[:, 0:lq, 0:hidden]
        for h in range(1, nh):
            acc = acc + big[:, h * lq:(h + 1) * lq,
                            h * hidden:(h + 1) * hidden]
        return acc.reshape(tn * lq, hidden)                      # (tn*Q, H) f32

    th = modality(text_ref, lt, _ROW_TEXT_G, 0)
    vh = modality(vis_ref, lv, _ROW_VIS_G, 1)

    # Fused gates: [tig | tfg | vig | vfg] from one 128-lane matmul.
    tv = jnp.concatenate([th, vh], axis=-1).astype(jnp.bfloat16)  # (tn*Q, 2H)
    g = (jnp.dot(tv, gatew_ref[...], preferred_element_type=jnp.float32)
         + bias_ref[_ROW_GATE_B:_ROW_GATE_B + 1, 0:4 * hidden])
    tig = jax.nn.sigmoid(g[:, 0:hidden])
    vig = jax.nn.sigmoid(g[:, 2 * hidden:3 * hidden])
    fgate = jax.nn.sigmoid(g[:, hidden:2 * hidden]
                           + g[:, 3 * hidden:4 * hidden])        # fgb folded

    act = jnp.tanh if use_tanh else (lambda v: v)
    qhs2 = actres_ref[...] * fgate + act(th) * tig + act(vh) * vig

    # MLP block.
    h = ln(qhs2, _ROW_MLP_G).astype(jnp.bfloat16)
    h = (jnp.dot(h, fc1_ref[...], preferred_element_type=jnp.float32)
         + bias_ref[_ROW_FC1_B:_ROW_FC1_B + 1, 0:inter])
    if activation_fn == "gelu":
        h = 0.5 * h * (1.0 + lax.erf(h * (1.0 / math.sqrt(2.0))))
    else:
        h = jnp.maximum(h, 0.0)
    h = (jnp.dot(h.astype(jnp.bfloat16), fc2_ref[...],
                 preferred_element_type=jnp.float32)
         + bias_ref[_ROW_FC2_B:_ROW_FC2_B + 1, 0:hidden])

    out_ref[...] = (qhs2 + h).astype(out_ref.dtype)


# ------------------------ hoisted query path (plain JAX) ----------------------

def _layernorm_jax(x, g, b, eps=1e-5):
    m = jnp.mean(x, axis=-1, keepdims=True)
    v = jnp.mean((x - m) ** 2, axis=-1, keepdims=True)
    return (x - m) / jnp.sqrt(v + eps) * g + b


def _self_attention_jax(x, in_w, in_b, out_w, out_b, nh):
    L, H = x.shape
    hd = H // nh
    hp = lax.Precision.HIGHEST
    qkv = jnp.dot(x, in_w.T, precision=hp) + in_b
    q, k, v = qkv[:, 0:H], qkv[:, H:2 * H], qkv[:, 2 * H:3 * H]
    q = q.reshape(L, nh, hd).transpose(1, 0, 2)
    k = k.reshape(L, nh, hd).transpose(1, 0, 2)
    v = v.reshape(L, nh, hd).transpose(1, 0, 2)
    s = jnp.einsum("hqd,hkd->hqk", q, k, precision=hp) / math.sqrt(hd)
    p = jax.nn.softmax(s, axis=-1)
    o = jnp.einsum("hqk,hkd->hqd", p, v, precision=hp)
    o = o.transpose(1, 0, 2).reshape(L, H)
    return jnp.dot(o, out_w.T, precision=hp) + out_b


# --------------------------------- wrapper ------------------------------------

def ret_cell_forward(q_init, text_kv, vision_kv, params, *, num_heads,
                     input_gate_bias_prior, forget_gate_bias_prior,
                     use_tanh=True, activation_fn="gelu", block_n=256):
    N, Lt, H = text_kv.shape
    Lv = vision_kv.shape[1]
    Q = q_init.shape[0]
    inter = params["fc1_w"].shape[0]
    nh = num_heads
    assert H % nh == 0
    hd = H // nh
    hp = lax.Precision.HIGHEST
    f32, bf16 = jnp.float32, jnp.bfloat16
    scale = 1.0 / math.sqrt(hd)

    # ---- batch-invariant query path (query_hidden_states is None) ----
    q0 = q_init.astype(f32)
    qhs = _layernorm_jax(q0, params["xa_ln_g"][0], params["xa_ln_b"][0])
    residual = q0 + _self_attention_jax(
        qhs, params["sa_in_w"].astype(f32), params["sa_in_b"][0].astype(f32),
        params["sa_out_w"].astype(f32), params["sa_out_b"][0].astype(f32), nh)
    act_res = jnp.tanh(residual) if use_tanh else residual

    # ---- fold the shared queries into the cross-attention weights ----
    def fold(in_w, out_w):
        in_w = in_w.astype(f32)
        out_w = out_w.astype(f32)
        wq, wk, wv = in_w[0:H], in_w[H:2 * H], in_w[2 * H:3 * H]
        qp = jnp.dot(qhs, wq.T, precision=hp) * scale             # (Q, H)
        qp_h = qp.reshape(Q, nh, hd).transpose(1, 0, 2)            # (nh, Q, hd)
        wk_h = wk.reshape(nh, hd, H)
        a = jnp.einsum("hed,hqe->dhq", wk_h, qp_h,
                       precision=hp).reshape(H, nh * Q)
        wv_h = wv.reshape(nh, hd, H)
        wo_h = out_w.reshape(H, nh, hd).transpose(1, 2, 0)         # (nh, hd, H)
        wvo = jnp.einsum("hed,heo->dho", wv_h, wo_h,
                         precision=hp).reshape(H, nh * H)
        return a, wvo

    a_t, wvo_t = fold(params["txa_in_w"], params["txa_out_w"])
    a_v, wvo_v = fold(params["vxa_in_w"], params["vxa_out_w"])
    a_pack = jnp.stack([a_t, a_v]).astype(bf16)                    # (2, H, nh*Q)
    wvo_pack = jnp.stack([wvo_t, wvo_v]).astype(bf16)              # (2, H, nh*H)

    # ---- block-diagonal fused gate weights: [tig | tfg | vig | vfg] ----
    zero = jnp.zeros((H, H), f32)
    gate_w = jnp.concatenate([
        jnp.concatenate([params["tig_w"].T, params["tfg_w"].T, zero, zero], 1),
        jnp.concatenate([zero, zero, params["vig_w"].T, params["vfg_w"].T], 1),
    ], axis=0).astype(bf16)                                        # (2H, 4H)
    igb = float(input_gate_bias_prior)
    fgb = float(forget_gate_bias_prior)
    gate_b = jnp.concatenate([
        params["tig_b"].reshape(-1) + igb,
        params["tfg_b"].reshape(-1) + fgb,         # forget-gate prior folded
        params["vig_b"].reshape(-1) + igb,
        params["vfg_b"].reshape(-1)]).astype(f32)                  # (4H,)

    fc1_wt = params["fc1_w"].T.astype(bf16)                        # (H, I)
    fc2_wt = params["fc2_w"].T.astype(bf16)                        # (I, H)

    wb = max(128, 4 * H, inter, H)
    wb = ((wb + 127) // 128) * 128

    def row(v):
        v = jnp.asarray(v, f32).reshape(-1)
        return jnp.pad(v, (0, wb - v.shape[0]))

    rows = [row(params["text_ln_g"]), row(params["text_ln_b"]),
            row(params["vision_ln_g"]), row(params["vision_ln_b"]),
            row(params["mlp_ln_g"]), row(params["mlp_ln_b"]),
            row(gate_b), row(params["fc1_b"]), row(params["fc2_b"])]
    rows += [jnp.zeros((wb,), f32)] * (_NUM_BIAS_ROWS - len(rows))
    bias_pack = jnp.stack(rows)                                    # (16, wb)

    # ---- batch tiling: >= 2 grid blocks when N >= 2 (keeps both v7x TCs busy),
    #      large tiles otherwise to amortize grid-step overhead ----
    tn = max(1, min(int(block_n), pl.cdiv(N, 2)))
    if tn < N and ((tn * Lt) % 8 or (tn * Lv) % 8 or (tn * Q) % 8):
        tn = N                      # fallback: single full block (no (8,·) rule)
    n_blocks = pl.cdiv(N, tn)
    n_pad = n_blocks * tn
    tkv = text_kv.astype(bf16)
    vkv = vision_kv.astype(bf16)
    if n_pad != N:
        tkv = jnp.pad(tkv, ((0, n_pad - N), (0, 0), (0, 0)))
        vkv = jnp.pad(vkv, ((0, n_pad - N), (0, 0), (0, 0)))
    text_rows = tkv.reshape(n_pad * Lt, H)          # pre-flattened 2-D slabs
    vis_rows = vkv.reshape(n_pad * Lv, H)
    actres_tiled = jnp.tile(act_res, (tn, 1))       # (tn*Q, H) f32, reused

    kernel = functools.partial(
        ret_cell_kernel, lt=Lt, lv=Lv, lq=Q, nh=nh,
        use_tanh=use_tanh, activation_fn=activation_fn)

    # Scoped-VMEM cap: default everywhere for small tiles, raised for big ones.
    vmem_limit = 32 * 1024 * 1024 if tn <= 64 else 64 * 1024 * 1024

    macs = n_pad * ((Lt + Lv) * H * (nh * Q + nh * H)      # score + VO matmuls
                    + nh * Q * (Lt + Lv) * nh * H          # attention apply
                    + Q * 2 * H * 4 * H                    # fused gates
                    + 2 * Q * H * inter)                   # MLP
    transcendentals = n_pad * Q * (nh * (Lt + Lv) + 4 * H + inter)
    bytes_accessed = (2 * n_pad * (Lt + Lv) * H + 4 * n_pad * Q * H
                      + 2 * (a_pack.size + wvo_pack.size + gate_w.size
                             + fc1_wt.size + fc2_wt.size)
                      + 4 * (bias_pack.size + actres_tiled.size))

    out_flat = pl.pallas_call(
        kernel,
        out_shape=jax.ShapeDtypeStruct((n_pad * Q, H), text_kv.dtype),
        grid=(n_blocks,),
        in_specs=[
            pl.BlockSpec((tn * Lt, H), lambda n: (n, 0)),      # text rows
            pl.BlockSpec((tn * Lv, H), lambda n: (n, 0)),      # vision rows
            pl.BlockSpec((tn * Q, H), lambda n: (0, 0)),       # act(residual)
            pl.BlockSpec(a_pack.shape, lambda n: (0, 0, 0)),   # folded scores W
            pl.BlockSpec(wvo_pack.shape, lambda n: (0, 0, 0)),  # fused V*Wo
            pl.BlockSpec(gate_w.shape, lambda n: (0, 0)),
            pl.BlockSpec(fc1_wt.shape, lambda n: (0, 0)),
            pl.BlockSpec(fc2_wt.shape, lambda n: (0, 0)),
            pl.BlockSpec(bias_pack.shape, lambda n: (0, 0)),
        ],
        out_specs=pl.BlockSpec((tn * Q, H), lambda n: (n, 0)),
        compiler_params=pltpu.CompilerParams(
            dimension_semantics=("parallel",),
            vmem_limit_bytes=vmem_limit),
        cost_estimate=pl.CostEstimate(
            flops=int(2 * macs), transcendentals=int(transcendentals),
            bytes_accessed=int(bytes_accessed)),
    )(text_rows, vis_rows, actres_tiled, a_pack, wvo_pack, gate_w,
      fc1_wt, fc2_wt, bias_pack)
    return out_flat.reshape(n_pad, Q, H)[:N]


# ----------------------------- pure-JAX reference -----------------------------

def ret_cell_reference(q_init, text_kv, vision_kv, p, *, num_heads, igb, fgb,
                       use_tanh=True, activation_fn="gelu"):
    hp = jax.lax.Precision.HIGHEST

    def ln(x, g, b, eps=1e-5):
        m = jnp.mean(x, -1, keepdims=True)
        v = jnp.mean((x - m) ** 2, -1, keepdims=True)
        return (x - m) / jnp.sqrt(v + eps) * g + b

    def lin(x, w, b=None):
        y = jnp.einsum("nld,od->nlo", x, w, precision=hp)
        return y + b if b is not None else y

    def mha(q, k, v, in_w, in_b, out_w, out_b):
        N, Lq, H = q.shape
        Lk = k.shape[1]
        hd = H // num_heads
        qq = lin(q, in_w[:H], in_b[:H] if in_b is not None else None)
        kk = lin(k, in_w[H:2 * H], in_b[H:2 * H] if in_b is not None else None)
        vv = lin(v, in_w[2 * H:], in_b[2 * H:] if in_b is not None else None)
        qq = qq.reshape(N, Lq, num_heads, hd).transpose(0, 2, 1, 3)
        kk = kk.reshape(N, Lk, num_heads, hd).transpose(0, 2, 1, 3)
        vv = vv.reshape(N, Lk, num_heads, hd).transpose(0, 2, 1, 3)
        s = jnp.einsum("nhqd,nhkd->nhqk", qq, kk, precision=hp) / math.sqrt(hd)
        a = jax.nn.softmax(s, axis=-1)
        o = jnp.einsum("nhqk,nhkd->nhqd", a, vv,
                       precision=hp).transpose(0, 2, 1, 3)
        o = o.reshape(N, Lq, H)
        o = jnp.einsum("nlo,po->nlp", o, out_w, precision=hp)
        return o + out_b if out_b is not None else o

    N = text_kv.shape[0]
    qhs0 = jnp.broadcast_to(q_init[None], (N,) + q_init.shape)
    residual = qhs0
    qhs = ln(qhs0, p["xa_ln_g"][0], p["xa_ln_b"][0])
    residual = residual + mha(qhs, qhs, qhs, p["sa_in_w"], p["sa_in_b"][0],
                              p["sa_out_w"], p["sa_out_b"][0])
    tkv = ln(text_kv, p["text_ln_g"][0], p["text_ln_b"][0])
    text_h = mha(qhs, tkv, tkv, p["txa_in_w"], None, p["txa_out_w"], None)
    vkv = ln(vision_kv, p["vision_ln_g"][0], p["vision_ln_b"][0])
    vision_h = mha(qhs, vkv, vkv, p["vxa_in_w"], None, p["vxa_out_w"], None)

    text_ig = jax.nn.sigmoid(lin(text_h, p["tig_w"], p["tig_b"][0]) + igb)
    text_fg = lin(text_h, p["tfg_w"], p["tfg_b"][0])
    vision_ig = jax.nn.sigmoid(lin(vision_h, p["vig_w"], p["vig_b"][0]) + igb)
    vision_fg = lin(vision_h, p["vfg_w"], p["vfg_b"][0])
    forget_gate = jax.nn.sigmoid(text_fg + vision_fg + fgb)

    act = jnp.tanh if use_tanh else (lambda v: v)
    qhs = (act(residual) * forget_gate
           + act(text_h) * text_ig
           + act(vision_h) * vision_ig)

    residual = qhs
    h = ln(qhs, p["mlp_ln_g"][0], p["mlp_ln_b"][0])
    h = lin(h, p["fc1_w"], p["fc1_b"][0])
    if activation_fn == "gelu":
        h = 0.5 * h * (1.0 + jax.scipy.special.erf(h / math.sqrt(2.0)))
    else:
        h = jnp.maximum(h, 0.0)
    h = lin(h, p["fc2_w"], p["fc2_b"][0])
    return residual + h


# --------------------------- deterministic params ------------------------------

def init_params(key, H, I):
    ks = iter(jax.random.split(key, 40))

    def w(shape, std=0.1):
        return (std * jax.random.normal(next(ks), shape)).astype(jnp.float32)

    p = {}
    for name in ["xa_ln", "text_ln", "vision_ln", "mlp_ln"]:
        p[name + "_g"] = jnp.ones((1, H), jnp.float32)
        p[name + "_b"] = jnp.zeros((1, H), jnp.float32)
    # self-attention (has biases)
    p["sa_in_w"] = w((3 * H, H));  p["sa_in_b"] = w((1, 3 * H), 0.02)
    p["sa_out_w"] = w((H, H));     p["sa_out_b"] = w((1, H), 0.02)
    # text / vision cross-attention (bias=False)
    p["txa_in_w"] = w((3 * H, H)); p["txa_out_w"] = w((H, H))
    p["vxa_in_w"] = w((3 * H, H)); p["vxa_out_w"] = w((H, H))
    # gate projections
    for name in ["tig", "vig", "tfg", "vfg"]:
        p[name + "_w"] = w((H, H)); p[name + "_b"] = w((1, H), 0.02)
    # MLP
    p["fc1_w"] = w((I, H)); p["fc1_b"] = w((1, I), 0.02)
    p["fc2_w"] = w((H, I)); p["fc2_b"] = w((1, H), 0.02)
    return p


# ----------------------------------- main --------------------------------------

if __name__ == "__main__":
    # synthetic RetConfig
    HIDDEN = 32
    INTER = 64
    NUM_QUERIES = 8
    NUM_HEADS = 4
    IGB = -1.0   # input_gate_bias_prior
    FGB = 1.0    # forget_gate_bias_prior
    USE_TANH = True
    ACT = "gelu"

    N, LT, LV = 2, 8, 16

    key = jax.random.PRNGKey(0)
    k_param, k_q, k_t, k_v = jax.random.split(key, 4)
    params = init_params(k_param, HIDDEN, INTER)

    # learned query states (nn.init.normal_(std=0.2))
    query_param = (0.2 * jax.random.normal(k_q, (1, NUM_QUERIES, HIDDEN))
                   ).astype(jnp.float32)
    # sinusoidal query_state_ids buffer (init_queries)
    position = jnp.arange(HIDDEN, dtype=jnp.float32)[:, None]
    div_term = jnp.exp(jnp.arange(0, HIDDEN, 2, dtype=jnp.float32)
                       * (-math.log(10000.0) / HIDDEN))
    pe = jnp.zeros((HIDDEN, HIDDEN), jnp.float32)
    pe = pe.at[:, 0::2].set(jnp.sin(position * div_term))
    pe = pe.at[:, 1::2].set(jnp.cos(position * div_term))
    query_state_ids = pe[:NUM_QUERIES, :]
    q_init = query_param[0] + query_state_ids            # (Q, H)

    text_kv = jax.random.normal(k_t, (N, LT, HIDDEN), jnp.float32)
    vision_kv = jax.random.normal(k_v, (N, LV, HIDDEN), jnp.float32)

    out = ret_cell_forward(q_init, text_kv, vision_kv, params,
                           num_heads=NUM_HEADS,
                           input_gate_bias_prior=IGB,
                           forget_gate_bias_prior=FGB,
                           use_tanh=USE_TANH,
                           activation_fn=ACT)
    out = jax.block_until_ready(out)
    assert out.shape == (N, NUM_QUERIES, HIDDEN)

    ref = ret_cell_reference(q_init, text_kv, vision_kv, params,
                             num_heads=NUM_HEADS, igb=IGB, fgb=FGB,
                             use_tanh=USE_TANH, activation_fn=ACT)
    ref = jax.block_until_ready(ref)
    max_diff = float(jnp.max(jnp.abs(out - ref)))
    # Tolerance covers bf16 MXU operands (f32 accumulation) plus the
    # approximate EUP reciprocal in the softmax denominator; everything else
    # (LayerNorm, gates, GELU) runs in f32.
    assert max_diff < 7.5e-2, f"kernel vs reference max diff {max_diff}"

    print("KERNEL_OK")
</pallas_src>

<mosaic_0001>
module attributes {stable_mosaic.version = 11 : i64} {
  func.func @ret_cell_kernel(%arg0: i32, %arg1: memref<8x32xbf16, #tpu.memory_space<vmem>>, %arg2: memref<16x32xbf16, #tpu.memory_space<vmem>>, %arg3: memref<8x32xf32, #tpu.memory_space<vmem>>, %arg4: memref<2x32x32xbf16, #tpu.memory_space<vmem>>, %arg5: memref<2x32x128xbf16, #tpu.memory_space<vmem>>, %arg6: memref<64x128xbf16, #tpu.memory_space<vmem>>, %arg7: memref<32x64xbf16, #tpu.memory_space<vmem>>, %arg8: memref<64x32xbf16, #tpu.memory_space<vmem>>, %arg9: memref<16x128xf32, #tpu.memory_space<vmem>>, %arg10: memref<8x32xf32, #tpu.memory_space<vmem>>) attributes {dimension_semantics = [#tpu.dimension_semantics<parallel>], iteration_bounds = array<i64: 2>, scalar_prefetch = 0 : i64, scratch_operands = 0 : i64, tpu.core_type = #tpu.core_type<tc>, window_params = [{transform_indices = @transform_0, window_bounds = array<i64: 8, 32>}, {transform_indices = @transform_1, window_bounds = array<i64: 16, 32>}, {pipeline_mode = #tpu.pipeline_mode<synchronous>, transform_indices = @transform_2, window_bounds = array<i64: 8, 32>}, {pipeline_mode = #tpu.pipeline_mode<synchronous>, transform_indices = @transform_3, window_bounds = array<i64: 2, 32, 32>}, {pipeline_mode = #tpu.pipeline_mode<synchronous>, transform_indices = @transform_4, window_bounds = array<i64: 2, 32, 128>}, {pipeline_mode = #tpu.pipeline_mode<synchronous>, transform_indices = @transform_5, window_bounds = array<i64: 64, 128>}, {pipeline_mode = #tpu.pipeline_mode<synchronous>, transform_indices = @transform_6, window_bounds = array<i64: 32, 64>}, {pipeline_mode = #tpu.pipeline_mode<synchronous>, transform_indices = @transform_7, window_bounds = array<i64: 64, 32>}, {pipeline_mode = #tpu.pipeline_mode<synchronous>, transform_indices = @transform_8, window_bounds = array<i64: 16, 128>}, {transform_indices = @transform_9, window_bounds = array<i64: 8, 32>}]} {
    %c0 = arith.constant 0 : index
    %c0_0 = arith.constant 0 : index
    %0 = vector.load %arg1[%c0, %c0_0] : memref<8x32xbf16, #tpu.memory_space<vmem>>, vector<8x32xbf16>
    %1 = arith.extf %0 : vector<8x32xbf16> to vector<8x32xf32>
    %c0_1 = arith.constant 0 : index
    %c0_2 = arith.constant 0 : index
    %2 = vector.load %arg9[%c0_1, %c0_2] : memref<16x128xf32, #tpu.memory_space<vmem>>, vector<1x32xf32>
    %c1 = arith.constant 1 : index
    %c0_3 = arith.constant 0 : index
    %3 = vector.load %arg9[%c1, %c0_3] : memref<16x128xf32, #tpu.memory_space<vmem>>, vector<1x32xf32>
    %cst = arith.constant dense<0.000000e+00> : vector<8xf32>
    %4 = vector.multi_reduction <add>, %1, %cst [1] : vector<8x32xf32> to vector<8xf32>
    %5 = vector.shape_cast %4 : vector<8xf32> to vector<8x1xf32>
    %cst_4 = arith.constant 3.200000e+01 : f32
    %6 = vector.broadcast %cst_4 : f32 to vector<8x1xf32>
    %7 = arith.divf %5, %6 : vector<8x1xf32>
    %8 = vector.broadcast %7 : vector<8x1xf32> to vector<8x32xf32>
    %9 = arith.subf %1, %8 : vector<8x32xf32>
    %10 = arith.mulf %9, %9 : vector<8x32xf32>
    %cst_5 = arith.constant dense<0.000000e+00> : vector<8xf32>
    %11 = vector.multi_reduction <add>, %10, %cst_5 [1] : vector<8x32xf32> to vector<8xf32>
    %12 = vector.shape_cast %11 : vector<8xf32> to vector<8x1xf32>
    %cst_6 = arith.constant 3.200000e+01 : f32
    %13 = vector.broadcast %cst_6 : f32 to vector<8x1xf32>
    %14 = arith.divf %12, %13 : vector<8x1xf32>
    %cst_7 = arith.constant 9.99999974E-6 : f32
    %15 = vector.broadcast %cst_7 : f32 to vector<8x1xf32>
    %16 = arith.addf %14, %15 : vector<8x1xf32>
    %17 = math.rsqrt %16 : vector<8x1xf32>
    %18 = vector.broadcast %17 : vector<8x1xf32> to vector<8x32xf32>
    %19 = arith.mulf %9, %18 : vector<8x32xf32>
    %20 = vector.broadcast %2 : vector<1x32xf32> to vector<8x32xf32>
    %21 = arith.mulf %19, %20 : vector<8x32xf32>
    %22 = vector.broadcast %3 : vector<1x32xf32> to vector<8x32xf32>
    %23 = arith.addf %21, %22 : vector<8x32xf32>
    %24 = arith.truncf %23 : vector<8x32xf32> to vector<8x32xbf16>
    %c0_8 = arith.constant 0 : index
    %c0_9 = arith.constant 0 : index
    %c0_10 = arith.constant 0 : index
    %25 = vector.load %arg4[%c0_8, %c0_9, %c0_10] : memref<2x32x32xbf16, #tpu.memory_space<vmem>>, vector<1x32x32xbf16>
    %26 = vector.shape_cast %25 : vector<1x32x32xbf16> to vector<32x32xbf16>
    %cst_11 = arith.constant dense<0.000000e+00> : vector<8x32xf32>
    %27 = tpu.matmul %24, %26, %cst_11 {dimension_numbers = #tpu.dot_dimension_numbers<[1], [0], [0], [1], [0, 0, 1, 1], [], []>} : vector<8x32xbf16>, vector<32x32xbf16>, vector<8x32xf32> -> vector<8x32xf32>
    %28 = vector.shape_cast %27 : vector<8x32xf32> to vector<1x8x32xf32>
    %29 = tpu.transpose %28, [0, 2, 1] : vector<1x8x32xf32> -> vector<1x32x8xf32>
    %cst_12 = arith.constant dense<0xFF800000> : vector<1x32xf32>
    %30 = vector.multi_reduction <maximumf>, %29, %cst_12 [2] : vector<1x32x8xf32> to vector<1x32xf32>
    %31 = vector.shape_cast %30 : vector<1x32xf32> to vector<1x32x1xf32>
    %32 = vector.broadcast %31 : vector<1x32x1xf32> to vector<1x32x8xf32>
    %33 = arith.subf %29, %32 : vector<1x32x8xf32>
    %34 = math.exp %33 : vector<1x32x8xf32>
    %cst_13 = arith.constant dense<0.000000e+00> : vector<1x32xf32>
    %35 = vector.multi_reduction <add>, %34, %cst_13 [2] : vector<1x32x8xf32> to vector<1x32xf32>
    %36 = vector.shape_cast %35 : vector<1x32xf32> to vector<1x32x1xf32>
    %37 = tpu.reciprocal %36 {approx = true} : vector<1x32x1xf32> -> vector<1x32x1xf32>
    %38 = vector.broadcast %37 : vector<1x32x1xf32> to vector<1x32x8xf32>
    %39 = arith.mulf %34, %38 : vector<1x32x8xf32>
    %c0_14 = arith.constant 0 : index
    %c0_15 = arith.constant 0 : index
    %c0_16 = arith.constant 0 : index
    %40 = vector.load %arg5[%c0_14, %c0_15, %c0_16] : memref<2x32x128xbf16, #tpu.memory_space<vmem>>, vector<1x32x128xbf16>
    %41 = vector.shape_cast %40 : vector<1x32x128xbf16> to vector<32x128xbf16>
    %cst_17 = arith.constant dense<0.000000e+00> : vector<8x128xf32>
    %42 = tpu.matmul %24, %41, %cst_17 {dimension_numbers = #tpu.dot_dimension_numbers<[1], [0], [0], [1], [0, 0, 1, 1], [], []>} : vector<8x32xbf16>, vector<32x128xbf16>, vector<8x128xf32> -> vector<8x128xf32>
    %43 = vector.shape_cast %42 : vector<8x128xf32> to vector<1x8x128xf32>
    %44 = arith.truncf %43 : vector<1x8x128xf32> to vector<1x8x128xbf16>
    %45 = arith.truncf %39 : vector<1x32x8xf32> to vector<1x32x8xbf16>
    %cst_18 = arith.constant dense<0.000000e+00> : vector<1x32x128xf32>
    %46 = tpu.matmul %45, %44, %cst_18 {dimension_numbers = #tpu.dot_dimension_numbers<[2], [1], [1], [2], [0, 0, 0, 1, 1, 2], [0], [0]>} : vector<1x32x8xbf16>, vector<1x8x128xbf16>, vector<1x32x128xf32> -> vector<1x32x128xf32>
    %47 = vector.extract_strided_slice %46 {offsets = [0, 0, 0], sizes = [1, 8, 32], strides = [1, 1, 1]} : vector<1x32x128xf32> to vector<1x8x32xf32>
    %48 = vector.extract_strided_slice %46 {offsets = [0, 8, 32], sizes = [1, 8, 32], strides = [1, 1, 1]} : vector<1x32x128xf32> to vector<1x8x32xf32>
    %49 = arith.addf %47, %48 : vector<1x8x32xf32>
    %50 = vector.extract_strided_slice %46 {offsets = [0, 16, 64], sizes = [1, 8, 32], strides = [1, 1, 1]} : vector<1x32x128xf32> to vector<1x8x32xf32>
    %51 = arith.addf %49, %50 : vector<1x8x32xf32>
    %52 = vector.extract_strided_slice %46 {offsets = [0, 24, 96], sizes = [1, 8, 32], strides = [1, 1, 1]} : vector<1x32x128xf32> to vector<1x8x32xf32>
    %53 = arith.addf %51, %52 : vector<1x8x32xf32>
    %54 = vector.shape_cast %53 : vector<1x8x32xf32> to vector<8x32xf32>
    %c0_19 = arith.constant 0 : index
    %c0_20 = arith.constant 0 : index
    %55 = vector.load %arg2[%c0_19, %c0_20] : memref<16x32xbf16, #tpu.memory_space<vmem>>, vector<16x32xbf16>
    %56 = arith.extf %55 : vector<16x32xbf16> to vector<16x32xf32>
    %c2 = arith.constant 2 : index
    %c0_21 = arith.constant 0 : index
    %57 = vector.load %arg9[%c2, %c0_21] : memref<16x128xf32, #tpu.memory_space<vmem>>, vector<1x32xf32>
    %c3 = arith.constant 3 : index
    %c0_22 = arith.constant 0 : index
    %58 = vector.load %arg9[%c3, %c0_22] : memref<16x128xf32, #tpu.memory_space<vmem>>, vector<1x32xf32>
    %cst_23 = arith.constant dense<0.000000e+00> : vector<16xf32>
    %59 = vector.multi_reduction <add>, %56, %cst_23 [1] : vector<16x32xf32> to vector<16xf32>
    %60 = vector.shape_cast %59 : vector<16xf32> to vector<16x1xf32>
    %cst_24 = arith.constant 3.200000e+01 : f32
    %61 = vector.broadcast %cst_24 : f32 to vector<16x1xf32>
    %62 = arith.divf %60, %61 : vector<16x1xf32>
    %63 = vector.broadcast %62 : vector<16x1xf32> to vector<16x32xf32>
    %64 = arith.subf %56, %63 : vector<16x32xf32>
    %65 = arith.mulf %64, %64 : vector<16x32xf32>
    %cst_25 = arith.constant dense<0.000000e+00> : vector<16xf32>
    %66 = vector.multi_reduction <add>, %65, %cst_25 [1] : vector<16x32xf32> to vector<16xf32>
    %67 = vector.shape_cast %66 : vector<16xf32> to vector<16x1xf32>
    %cst_26 = arith.constant 3.200000e+01 : f32
    %68 = vector.broadcast %cst_26 : f32 to vector<16x1xf32>
    %69 = arith.divf %67, %68 : vector<16x1xf32>
    %cst_27 = arith.constant 9.99999974E-6 : f32
    %70 = vector.broadcast %cst_27 : f32 to vector<16x1xf32>
    %71 = arith.addf %69, %70 : vector<16x1xf32>
    %72 = math.rsqrt %71 : vector<16x1xf32>
    %73 = vector.broadcast %72 : vector<16x1xf32> to vector<16x32xf32>
    %74 = arith.mulf %64, %73 : vector<16x32xf32>
    %75 = vector.broadcast %57 : vector<1x32xf32> to vector<16x32xf32>
    %76 = arith.mulf %74, %75 : vector<16x32xf32>
    %77 = vector.broadcast %58 : vector<1x32xf32> to vector<16x32xf32>
    %78 = arith.addf %76, %77 : vector<16x32xf32>
    %79 = arith.truncf %78 : vector<16x32xf32> to vector<16x32xbf16>
    %c1_28 = arith.constant 1 : index
    %c0_29 = arith.constant 0 : index
    %c0_30 = arith.constant 0 : index
    %80 = vector.load %arg4[%c1_28, %c0_29, %c0_30] : memref<2x32x32xbf16, #tpu.memory_space<vmem>>, vector<1x32x32xbf16>
    %81 = vector.shape_cast %80 : vector<1x32x32xbf16> to vector<32x32xbf16>
    %cst_31 = arith.constant dense<0.000000e+00> : vector<16x32xf32>
    %82 = tpu.matmul %79, %81, %cst_31 {dimension_numbers = #tpu.dot_dimension_numbers<[1], [0], [0], [1], [0, 0, 1, 1], [], []>} : vector<16x32xbf16>, vector<32x32xbf16>, vector<16x32xf32> -> vector<16x32xf32>
    %83 = vector.shape_cast %82 : vector<16x32xf32> to vector<1x16x32xf32>
    %84 = tpu.transpose %83, [0, 2, 1] : vector<1x16x32xf32> -> vector<1x32x16xf32>
    %cst_32 = arith.constant dense<0xFF800000> : vector<1x32xf32>
    %85 = vector.multi_reduction <maximumf>, %84, %cst_32 [2] : vector<1x32x16xf32> to vector<1x32xf32>
    %86 = vector.shape_cast %85 : vector<1x32xf32> to vector<1x32x1xf32>
    %87 = vector.broadcast %86 : vector<1x32x1xf32> to vector<1x32x16xf32>
    %88 = arith.subf %84, %87 : vector<1x32x16xf32>
    %89 = math.exp %88 : vector<1x32x16xf32>
    %cst_33 = arith.constant dense<0.000000e+00> : vector<1x32xf32>
    %90 = vector.multi_reduction <add>, %89, %cst_33 [2] : vector<1x32x16xf32> to vector<1x32xf32>
    %91 = vector.shape_cast %90 : vector<1x32xf32> to vector<1x32x1xf32>
    %92 = tpu.reciprocal %91 {approx = true} : vector<1x32x1xf32> -> vector<1x32x1xf32>
    %93 = vector.broadcast %92 : vector<1x32x1xf32> to vector<1x32x16xf32>
    %94 = arith.mulf %89, %93 : vector<1x32x16xf32>
    %c1_34 = arith.constant 1 : index
    %c0_35 = arith.constant 0 : index
    %c0_36 = arith.constant 0 : index
    %95 = vector.load %arg5[%c1_34, %c0_35, %c0_36] : memref<2x32x128xbf16, #tpu.memory_space<vmem>>, vector<1x32x128xbf16>
    %96 = vector.shape_cast %95 : vector<1x32x128xbf16> to vector<32x128xbf16>
    %cst_37 = arith.constant dense<0.000000e+00> : vector<16x128xf32>
    %97 = tpu.matmul %79, %96, %cst_37 {dimension_numbers = #tpu.dot_dimension_numbers<[1], [0], [0], [1], [0, 0, 1, 1], [], []>} : vector<16x32xbf16>, vector<32x128xbf16>, vector<16x128xf32> -> vector<16x128xf32>
    %98 = vector.shape_cast %97 : vector<16x128xf32> to vector<1x16x128xf32>
    %99 = arith.truncf %98 : vector<1x16x128xf32> to vector<1x16x128xbf16>
    %100 = arith.truncf %94 : vector<1x32x16xf32> to vector<1x32x16xbf16>
    %cst_38 = arith.constant dense<0.000000e+00> : vector<1x32x128xf32>
    %101 = tpu.matmul %100, %99, %cst_38 {dimension_numbers = #tpu.dot_dimension_numbers<[2], [1], [1], [2], [0, 0, 0, 1, 1, 2], [0], [0]>} : vector<1x32x16xbf16>, vector<1x16x128xbf16>, vector<1x32x128xf32> -> vector<1x32x128xf32>
    %102 = vector.extract_strided_slice %101 {offsets = [0, 0, 0], sizes = [1, 8, 32], strides = [1, 1, 1]} : vector<1x32x128xf32> to vector<1x8x32xf32>
    %103 = vector.extract_strided_slice %101 {offsets = [0, 8, 32], sizes = [1, 8, 32], strides = [1, 1, 1]} : vector<1x32x128xf32> to vector<1x8x32xf32>
    %104 = arith.addf %102, %103 : vector<1x8x32xf32>
    %105 = vector.extract_strided_slice %101 {offsets = [0, 16, 64], sizes = [1, 8, 32], strides = [1, 1, 1]} : vector<1x32x128xf32> to vector<1x8x32xf32>
    %106 = arith.addf %104, %105 : vector<1x8x32xf32>
    %107 = vector.extract_strided_slice %101 {offsets = [0, 24, 96], sizes = [1, 8, 32], strides = [1, 1, 1]} : vector<1x32x128xf32> to vector<1x8x32xf32>
    %108 = arith.addf %106, %107 : vector<1x8x32xf32>
    %109 = vector.shape_cast %108 : vector<1x8x32xf32> to vector<8x32xf32>
    %110 = tpu.concatenate %54, %109 in 1 : vector<8x32xf32>, vector<8x32xf32> -> vector<8x64xf32>
    %111 = arith.truncf %110 : vector<8x64xf32> to vector<8x64xbf16>
    %c0_39 = arith.constant 0 : index
    %c0_40 = arith.constant 0 : index
    %112 = vector.load %arg6[%c0_39, %c0_40] : memref<64x128xbf16, #tpu.memory_space<vmem>>, vector<64x128xbf16>
    %cst_41 = arith.constant dense<0.000000e+00> : vector<8x128xf32>
    %113 = tpu.matmul %111, %112, %cst_41 {dimension_numbers = #tpu.dot_dimension_numbers<[1], [0], [0], [1], [0, 0, 1, 1], [], []>} : vector<8x64xbf16>, vector<64x128xbf16>, vector<8x128xf32> -> vector<8x128xf32>
    %c6 = arith.constant 6 : index
    %c0_42 = arith.constant 0 : index
    %114 = vector.load %arg9[%c6, %c0_42] : memref<16x128xf32, #tpu.memory_space<vmem>>, vector<1x128xf32>
    %115 = vector.broadcast %114 : vector<1x128xf32> to vector<8x128xf32>
    %116 = arith.addf %113, %115 : vector<8x128xf32>
    %117 = vector.extract_strided_slice %116 {offsets = [0, 0], sizes = [8, 32], strides = [1, 1]} : vector<8x128xf32> to vector<8x32xf32>
    %118 = arith.negf %117 : vector<8x32xf32>
    %119 = math.exp %118 : vector<8x32xf32>
    %cst_43 = arith.constant 1.000000e+00 : f32
    %120 = vector.broadcast %cst_43 : f32 to vector<8x32xf32>
    %121 = arith.addf %120, %119 : vector<8x32xf32>
    %122 = arith.divf %120, %121 : vector<8x32xf32>
    %123 = vector.extract_strided_slice %116 {offsets = [0, 64], sizes = [8, 32], strides = [1, 1]} : vector<8x128xf32> to vector<8x32xf32>
    %124 = arith.negf %123 : vector<8x32xf32>
    %125 = math.exp %124 : vector<8x32xf32>
    %cst_44 = arith.constant 1.000000e+00 : f32
    %126 = vector.broadcast %cst_44 : f32 to vector<8x32xf32>
    %127 = arith.addf %126, %125 : vector<8x32xf32>
    %128 = arith.divf %126, %127 : vector<8x32xf32>
    %129 = vector.extract_strided_slice %116 {offsets = [0, 32], sizes = [8, 32], strides = [1, 1]} : vector<8x128xf32> to vector<8x32xf32>
    %130 = vector.extract_strided_slice %116 {offsets = [0, 96], sizes = [8, 32], strides = [1, 1]} : vector<8x128xf32> to vector<8x32xf32>
    %131 = arith.addf %129, %130 : vector<8x32xf32>
    %132 = arith.negf %131 : vector<8x32xf32>
    %133 = math.exp %132 : vector<8x32xf32>
    %cst_45 = arith.constant 1.000000e+00 : f32
    %134 = vector.broadcast %cst_45 : f32 to vector<8x32xf32>
    %135 = arith.addf %134, %133 : vector<8x32xf32>
    %136 = arith.divf %134, %135 : vector<8x32xf32>
    %c0_46 = arith.constant 0 : index
    %c0_47 = arith.constant 0 : index
    %137 = vector.load %arg3[%c0_46, %c0_47] : memref<8x32xf32, #tpu.memory_space<vmem>>, vector<8x32xf32>
    %138 = arith.mulf %137, %136 : vector<8x32xf32>
    %139 = math.tanh %54 : vector<8x32xf32>
    %140 = arith.mulf %139, %122 : vector<8x32xf32>
    %141 = arith.addf %138, %140 : vector<8x32xf32>
    %142 = math.tanh %109 : vector<8x32xf32>
    %143 = arith.mulf %142, %128 : vector<8x32xf32>
    %144 = arith.addf %141, %143 : vector<8x32xf32>
    %c4 = arith.constant 4 : index
    %c0_48 = arith.constant 0 : index
    %145 = vector.load %arg9[%c4, %c0_48] : memref<16x128xf32, #tpu.memory_space<vmem>>, vector<1x32xf32>
    %c5 = arith.constant 5 : index
    %c0_49 = arith.constant 0 : index
    %146 = vector.load %arg9[%c5, %c0_49] : memref<16x128xf32, #tpu.memory_space<vmem>>, vector<1x32xf32>
    %cst_50 = arith.constant dense<0.000000e+00> : vector<8xf32>
    %147 = vector.multi_reduction <add>, %144, %cst_50 [1] : vector<8x32xf32> to vector<8xf32>
    %148 = vector.shape_cast %147 : vector<8xf32> to vector<8x1xf32>
    %cst_51 = arith.constant 3.200000e+01 : f32
    %149 = vector.broadcast %cst_51 : f32 to vector<8x1xf32>
    %150 = arith.divf %148, %149 : vector<8x1xf32>
    %151 = vector.broadcast %150 : vector<8x1xf32> to vector<8x32xf32>
    %152 = arith.subf %144, %151 : vector<8x32xf32>
    %153 = arith.mulf %152, %152 : vector<8x32xf32>
    %cst_52 = arith.constant dense<0.000000e+00> : vector<8xf32>
    %154 = vector.multi_reduction <add>, %153, %cst_52 [1] : vector<8x32xf32> to vector<8xf32>
    %155 = vector.shape_cast %154 : vector<8xf32> to vector<8x1xf32>
    %cst_53 = arith.constant 3.200000e+01 : f32
    %156 = vector.broadcast %cst_53 : f32 to vector<8x1xf32>
    %157 = arith.divf %155, %156 : vector<8x1xf32>
    %cst_54 = arith.constant 9.99999974E-6 : f32
    %158 = vector.broadcast %cst_54 : f32 to vector<8x1xf32>
    %159 = arith.addf %157, %158 : vector<8x1xf32>
    %160 = math.rsqrt %159 : vector<8x1xf32>
    %161 = vector.broadcast %160 : vector<8x1xf32> to vector<8x32xf32>
    %162 = arith.mulf %152, %161 : vector<8x32xf32>
    %163 = vector.broadcast %145 : vector<1x32xf32> to vector<8x32xf32>
    %164 = arith.mulf %162, %163 : vector<8x32xf32>
    %165 = vector.broadcast %146 : vector<1x32xf32> to vector<8x32xf32>
    %166 = arith.addf %164, %165 : vector<8x32xf32>
    %167 = arith.truncf %166 : vector<8x32xf32> to vector<8x32xbf16>
    %c0_55 = arith.constant 0 : index
    %c0_56 = arith.constant 0 : index
    %168 = vector.load %arg7[%c0_55, %c0_56] : memref<32x64xbf16, #tpu.memory_space<vmem>>, vector<32x64xbf16>
    %cst_57 = arith.constant dense<0.000000e+00> : vector<8x64xf32>
    %169 = tpu.matmul %167, %168, %cst_57 {dimension_numbers = #tpu.dot_dimension_numbers<[1], [0], [0], [1], [0, 0, 1, 1], [], []>} : vector<8x32xbf16>, vector<32x64xbf16>, vector<8x64xf32> -> vector<8x64xf32>
    %c7 = arith.constant 7 : index
    %c0_58 = arith.constant 0 : index
    %170 = vector.load %arg9[%c7, %c0_58] : memref<16x128xf32, #tpu.memory_space<vmem>>, vector<1x64xf32>
    %171 = vector.broadcast %170 : vector<1x64xf32> to vector<8x64xf32>
    %172 = arith.addf %169, %171 : vector<8x64xf32>
    %cst_59 = arith.constant 5.000000e-01 : f32
    %173 = vector.broadcast %cst_59 : f32 to vector<8x64xf32>
    %174 = arith.mulf %173, %172 : vector<8x64xf32>
    %cst_60 = arith.constant 0.707106769 : f32
    %175 = vector.broadcast %cst_60 : f32 to vector<8x64xf32>
    %176 = arith.mulf %172, %175 : vector<8x64xf32>
    %177 = math.erf %176 : vector<8x64xf32>
    %cst_61 = arith.constant 1.000000e+00 : f32
    %178 = vector.broadcast %cst_61 : f32 to vector<8x64xf32>
    %179 = arith.addf %178, %177 : vector<8x64xf32>
    %180 = arith.mulf %174, %179 : vector<8x64xf32>
    %181 = arith.truncf %180 : vector<8x64xf32> to vector<8x64xbf16>
    %c0_62 = arith.constant 0 : index
    %c0_63 = arith.constant 0 : index
    %182 = vector.load %arg8[%c0_62, %c0_63] : memref<64x32xbf16, #tpu.memory_space<vmem>>, vector<64x32xbf16>
    %cst_64 = arith.constant dense<0.000000e+00> : vector<8x32xf32>
    %183 = tpu.matmul %181, %182, %cst_64 {dimension_numbers = #tpu.dot_dimension_numbers<[1], [0], [0], [1], [0, 0, 1, 1], [], []>} : vector<8x64xbf16>, vector<64x32xbf16>, vector<8x32xf32> -> vector<8x32xf32>
    %c8 = arith.constant 8 : index
    %c0_65 = arith.constant 0 : index
    %184 = vector.load %arg9[%c8, %c0_65] : memref<16x128xf32, #tpu.memory_space<vmem>>, vector<1x32xf32>
    %185 = vector.broadcast %184 : vector<1x32xf32> to vector<8x32xf32>
    %186 = arith.addf %183, %185 : vector<8x32xf32>
    %187 = arith.addf %144, %186 : vector<8x32xf32>
    %c0_66 = arith.constant 0 : index
    %c0_67 = arith.constant 0 : index
    %188 = vector.load %arg10[%c0_66, %c0_67] : memref<8x32xf32, #tpu.memory_space<vmem>>, vector<8x32xf32>
    tpu.vector_store %arg10[%c0_66, %c0_67], %187 {strides = array<i32>} : memref<8x32xf32, #tpu.memory_space<vmem>>, vector<8x32xf32>,
    return
  }
  func.func @transform_0(%arg0: i32) -> (i32, i32) {
    %c0_i32 = arith.constant 0 : i32
    %c0_i32_0 = arith.constant 0 : i32
    return %arg0, %c0_i32 : i32, i32
  }
  func.func @transform_1(%arg0: i32) -> (i32, i32) {
    %c0_i32 = arith.constant 0 : i32
    %c0_i32_0 = arith.constant 0 : i32
    return %arg0, %c0_i32 : i32, i32
  }
  func.func @transform_2(%arg0: i32) -> (i32, i32) {
    %c0_i32 = arith.constant 0 : i32
    %c0_i32_0 = arith.constant 0 : i32
    %c0_i32_1 = arith.constant 0 : i32
    return %c0_i32, %c0_i32_0 : i32, i32
  }
  func.func @transform_3(%arg0: i32) -> (i32, i32, i32) {
    %c0_i32 = arith.constant 0 : i32
    %c0_i32_0 = arith.constant 0 : i32
    %c0_i32_1 = arith.constant 0 : i32
    %c0_i32_2 = arith.constant 0 : i32
    return %c0_i32, %c0_i32_0, %c0_i32_1 : i32, i32, i32
  }
  func.func @transform_4(%arg0: i32) -> (i32, i32, i32) {
    %c0_i32 = arith.constant 0 : i32
    %c0_i32_0 = arith.constant 0 : i32
    %c0_i32_1 = arith.constant 0 : i32
    %c0_i32_2 = arith.constant 0 : i32
    return %c0_i32, %c0_i32_0, %c0_i32_1 : i32, i32, i32
  }
  func.func @transform_5(%arg0: i32) -> (i32, i32) {
    %c0_i32 = arith.constant 0 : i32
    %c0_i32_0 = arith.constant 0 : i32
    %c0_i32_1 = arith.constant 0 : i32
    return %c0_i32, %c0_i32_0 : i32, i32
  }
  func.func @transform_6(%arg0: i32) -> (i32, i32) {
    %c0_i32 = arith.constant 0 : i32
    %c0_i32_0 = arith.constant 0 : i32
    %c0_i32_1 = arith.constant 0 : i32
    return %c0_i32, %c0_i32_0 : i32, i32
  }
  func.func @transform_7(%arg0: i32) -> (i32, i32) {
    %c0_i32 = arith.constant 0 : i32
    %c0_i32_0 = arith.constant 0 : i32
    %c0_i32_1 = arith.constant 0 : i32
    return %c0_i32, %c0_i32_0 : i32, i32
  }
  func.func @transform_8(%arg0: i32) -> (i32, i32) {
    %c0_i32 = arith.constant 0 : i32
    %c0_i32_0 = arith.constant 0 : i32
    %c0_i32_1 = arith.constant 0 : i32
    return %c0_i32, %c0_i32_0 : i32, i32
  }
  func.func @transform_9(%arg0: i32) -> (i32, i32) {
    %c0_i32 = arith.constant 0 : i32
    %c0_i32_0 = arith.constant 0 : i32
    return %arg0, %c0_i32 : i32, i32
  }
}

</mosaic_0001>

<bundles_post_ra>
// kernel: tpu_custom_call.1
= control target key start
LH: loop header
LB: loop body
LE: loop exit
PB: predicated region body
PF: predicated region fallthrough
CT: control target
= control target key end

     0   :  { %s2637_s0 = inlined_call_operand.hbm [shape: bf16[16,32], index: 0, kind: input, shape index: {}]   ;;  %s2638_s1 = inlined_call_operand.hbm [shape: bf16[32,32], index: 1, kind: input, shape index: {}]   ;;  %s2639_s2 = inlined_call_operand.hbm [shape: f32[8,32], index: 2, kind: input, shape index: {}]   ;;  %s2640_s3 = inlined_call_operand.vmem [shape: bf16[2,32,32], index: 3, kind: input, shape index: {}]   ;;  %s2641_s4 = inlined_call_operand.hbm [shape: bf16[2,32,128], index: 4, kind: input, shape index: {}]   ;;  %s2642_s5 = inlined_call_operand.vmem [shape: bf16[64,128], index: 5, kind: input, shape index: {}]   ;;  %s2643_s6 = inlined_call_operand.hbm [shape: bf16[32,64], index: 6, kind: input, shape index: {}]   ;;  %s2644_s7 = inlined_call_operand.vmem [shape: bf16[64,32], index: 7, kind: input, shape index: {}]   ;;  %s2645_s8 = inlined_call_operand.hbm [shape: f32[16,128], index: 8, kind: input, shape index: {}]   ;;  %s2646_s9 = inlined_call_operand.hbm [shape: f32[16,32], index: 9, kind: output, shape index: {}]  }
   0x1   :  { %2652 = sst [smem:[#allocation20_spill]] %s2637_s0 }
   0x2   :  { %2653 = sst [smem:[#allocation21_spill]] %s2639_s2 }
   0x3   :  { %2654 = sst [smem:[#allocation22_spill]] %s2641_s4 }
   0x4   :  { %2655 = sst [smem:[#allocation23_spill]] %s2643_s6 }
   0x5   :  { %2656 = sst [smem:[#allocation24_spill]] %s2645_s8 }
   0x6   :  { %14 = vsyncpa [#allocation3], 0 }
   0x7   :  { %16 = vsyncpa [#allocation3 + $0x1], 0 }
   0x8   :  { %17 = vsyncpa [#allocation6], 0 }
   0x9   :  { %19 = vsyncpa [#allocation6 + $0x1], 0 }
   0xa   :  { %20 = vsyncpa [#allocation9], 0 }
   0xb   :  { %21 = vsyncpa [#allocation12], 0 }
   0xc   :  { %22 = vsyncpa [#allocation4], 0 }
   0xd   :  { %24 = vsyncpa [#allocation4 + $0x1], 0  ;;  %s2178_s30 = smov 0   ;;  %s2180_s10 = smov 0  }
   0xe   :  { %s2182_s11 = smov 0   ;;  %s2184_s12 = smov 0  }
   0xf LB: > { %s2112_s13 = smov [#allocation7]   ;;  %s2199_s15 = sadd.s32 4294967295, %s2110_s12   ;;  %s2110_s12 = sphi %s2184_s12, %s2687_s12   ;;  %s2106_s11 = sphi %s2182_s11, %s2686_s11   ;;  %s2102_s10 = sphi %s2180_s10, %s2685_s10   ;;  %s2098_s30 = sphi %s2178_s30, %s2684_s30  }
  0x10   : > { %s273_s14 = sshll.u32 %s2112_s13, 4  ;;  %p1503_p0 = scmp.ge.s32.totalorder %s2110_s12, 1  ;;  %s274_s14 = int_to_ptr.vmem [resolvable:$true] %s273_s14 }
  0x11   : > { %p2647_p1 = scmp.eq.s32.totalorder %s2199_s15, 0  ;;  %p260_p2 = scmp.lt.s32.totalorder %s2110_s12, 3 }
  0x12   : > { %s2113_s17 = smov [#allocation8]   ;;  %s2114_s20 = smov [#allocation10]  }
  0x13   : > { %p2204_p3 = pnand %p1503_p0, %p260_p2  ;;  %s286_s18 = sshll.u32 %s2113_s17, 4  ;;  %s2211_s18 = int_to_ptr.vmem [resolvable:$true] %s286_s18 }
  0x14   : > { %s302_s21 = sshll.u32 %s2114_s20, 4  ;;  %s2659_s2 = sld [smem:[#allocation21_spill]]  ;;  %s2219_s21 = int_to_ptr.vmem [resolvable:$true] %s302_s21 }
  0x15   : > { %s2657_s16 = scalar_select %p2204_p3, 1, 0 }
  0x16   : > { %p1705_p5 = pneg %p2204_p3 }
  0x18   : > { %p2215_p6 = pnand %p1705_p5, %p2647_p1 }
  0x1a   : > { %s1856_s24 = scalar_lea.hbm %s2659_s2, 128  ;;  %p2229_p8 = pneg %p2215_p6 }
  0x1b   : > { %p1857_p7 = scmp.ne.s32.totalorder %s2659_s2, %s1856_s24  ;;  %p1863_p11 = scmp.lt.u32.totalorder %s1856_s24, %s2659_s2 }
  0x1d   : > { %p1859_p9 = pnand %p2229_p8, %p1857_p7 }
  0x1f   : > { %p1860_p10 = pneg %p1859_p9 }
  0x21   : > { %p1865_p12 = pnand %p1863_p11, %p1860_p10 }
  0x23   : > { %1868 = shalt.err (!%p1865_p12)
}
  0x24   : > { %s1869_s13 = scalar_lea.vmem %s274_s14, 128  ;;  %p1877_p5 = scmp.lt.s32.totalorder %s274_s14, %s274_s14 }
  0x25   : > { %p1870_p13 = scmp.ne.s32.totalorder %s274_s14, %s1869_s13  ;;  %p1878_p4 = scmp.lt.s32.totalorder %s1869_s13, %s1869_s13 }
  0x27   : > { %p1872_p0 = pnand %p1870_p13, %p2229_p8  ;;  %p1879_p1 = por %p1878_p4, %p1877_p5 }
  0x29   : > { %p1873_p2 = pneg %p1872_p0 }
  0x2b   : > { %p1880_p3 = pnand %p1879_p1, %p1873_p2 }
  0x2d   : > { %1883 = shalt.err (!%p1880_p3)
}
  0x2e   : > { %1708 = dma.hbm_to_vmem [thread:$0]  (!%p2215_p6), %s2659_s2, 128, %s274_s14, [#allocation6]  }
  0x2f   : > { %s2661_s4 = sld [smem:[#allocation22_spill]] }
  0x35   : > { %s1884_s24 = scalar_lea.hbm %s2661_s4, 512 }
  0x36   : > { %p1885_p7 = scmp.ne.s32.totalorder %s2661_s4, %s1884_s24  ;;  %p1891_p1 = scmp.lt.u32.totalorder %s1884_s24, %s2661_s4 }
  0x38   : > { %p1887_p9 = pnand %p1885_p7, %p2229_p8 }
  0x3a   : > { %p1888_p4 = pneg %p1887_p9 }
  0x3c   : > { %p1893_p3 = pnand %p1891_p1, %p1888_p4 }
  0x3e   : > { %1896 = shalt.err (!%p1893_p3)
}
  0x3f   : > { %s1897_s14 = scalar_lea.vmem %s2211_s18, 512  ;;  %p1905_p13 = scmp.lt.s32.totalorder %s2211_s18, %s2211_s18 }
  0x40   : > { %p1898_p10 = scmp.ne.s32.totalorder %s2211_s18, %s1897_s14  ;;  %p1906_p0 = scmp.lt.s32.totalorder %s1897_s14, %s1897_s14 }
  0x42   : > { %p1900_p11 = pnand %p1898_p10, %p2229_p8  ;;  %p1907_p2 = por %p1906_p0, %p1905_p13 }
  0x44   : > { %p1901_p12 = pneg %p1900_p11 }
  0x46   : > { %p1908_p5 = pnand %p1907_p2, %p1901_p12 }
  0x48   : > { %1911 = shalt.err (!%p1908_p5)
}
  0x49   : > { %s2649_s13 = smov 64   ;;  %s2650_s17 = smov 4  }
  0x4a   : > { %1711 = dma.hbm_to_vmem [thread:$0]  (!%p2215_p6), %s2661_s4, 512, %s2211_s18, [#allocation9], %s2649_s13, %s2649_s13, %s2650_s17  }
  0x4b   : > { %s2662_s6 = sld [smem:[#allocation23_spill]] }
  0x51   : > { %s1912_s25 = scalar_lea.hbm %s2662_s6, 256 }
  0x52   : > { %p1913_p7 = scmp.ne.s32.totalorder %s2662_s6, %s1912_s25  ;;  %p1919_p1 = scmp.lt.u32.totalorder %s1912_s25, %s2662_s6 }
  0x54   : > { %p1915_p9 = pnand %p1913_p7, %p2229_p8 }
  0x56   : > { %p1916_p4 = pneg %p1915_p9 }
  0x58   : > { %p1921_p3 = pnand %p1919_p1, %p1916_p4 }
  0x5a   : > { %1924 = shalt.err (!%p1921_p3)
}
  0x5b   : > { %s1925_s18 = scalar_lea.vmem %s2219_s21, 256  ;;  %p1933_p13 = scmp.lt.s32.totalorder %s2219_s21, %s2219_s21 }
  0x5c   : > { %p1926_p10 = scmp.ne.s32.totalorder %s2219_s21, %s1925_s18  ;;  %p1934_p0 = scmp.lt.s32.totalorder %s1925_s18, %s1925_s18 }
  0x5e   : > { %p1928_p11 = pnand %p1926_p10, %p2229_p8  ;;  %p1935_p2 = por %p1934_p0, %p1933_p13 }
  0x60   : > { %p1929_p12 = pneg %p1928_p11 }
  0x62   : > { %p1936_p5 = pnand %p1935_p2, %p1929_p12 }
  0x64   : > { %1939 = shalt.err (!%p1936_p5)
}
  0x65   : > { %1714 = dma.hbm_to_vmem [thread:$0]  (!%p2215_p6), %s2662_s6, 256, %s2219_s21, [#allocation9], %s2649_s13, %s2649_s13, %s2650_s17  }
  0x66   : > { %s2117_s23 = smov [#allocation11]   ;;  %s2663_s8 = sld [smem:[#allocation24_spill]] }
  0x67   : > { %s318_s24 = sshll.u32 %s2117_s23, 4  ;;  %s319_s24 = int_to_ptr.vmem [resolvable:$true] %s318_s24 }
  0x6c   : > { %s1940_s28 = scalar_lea.hbm %s2663_s8, 256 }
  0x6d   : > { %p1941_p7 = scmp.ne.s32.totalorder %s2663_s8, %s1940_s28  ;;  %p1947_p1 = scmp.lt.u32.totalorder %s1940_s28, %s2663_s8 }
  0x6f   : > { %p1943_p9 = pnand %p1941_p7, %p2229_p8 }
  0x71   : > { %p1944_p4 = pneg %p1943_p9 }
  0x73   : > { %p1949_p3 = pnand %p1947_p1, %p1944_p4 }
  0x75   : > { %1952 = shalt.err (!%p1949_p3)
}
  0x76   : > { %s1953_s21 = scalar_lea.vmem %s319_s24, 256  ;;  %p1961_p13 = scmp.lt.s32.totalorder %s319_s24, %s319_s24 }
  0x77   : > { %p1954_p10 = scmp.ne.s32.totalorder %s319_s24, %s1953_s21  ;;  %p1962_p0 = scmp.lt.s32.totalorder %s1953_s21, %s1953_s21 }
  0x79   : > { %p1956_p11 = pnand %p1954_p10, %p2229_p8  ;;  %p1963_p2 = por %p1962_p0, %p1961_p13 }
  0x7b   : > { %p1957_p12 = pneg %p1956_p11 }
  0x7d   : > { %p1964_p5 = pnand %p1963_p2, %p1957_p12 }
  0x7f   : > { %1967 = shalt.err (!%p1964_p5)
}
  0x80   : > { %s2118_s20 = smov 128   ;;  %s2119_s2 = smov 8  }
  0x81   : > { %1717 = dma.hbm_to_vmem [thread:$0]  (!%p2215_p6), %s2663_s8, 256, %s319_s24, [#allocation12], %s2118_s20, %s2118_s20, %s2119_s2  }
  0x82   : > { %s1502_s23 = sadd.s32 4294967294, %s2110_s12   ;;  %s2317_s25 = sadd.s32 1, %s2110_s12  }
  0x83   : > { %s34_s26 = ssub.s32 %s2110_s12, %s2317_s25  ;;  %s37_s28 = sadd.s32 1, %s2106_s11 }
  0x84   : > { %p35_p8 = scmp.eq.s32.totalorder %s34_s26, 0  ;;  %p44_p7 = scmp.ne.s32.totalorder %s2106_s11, %s2102_s10 }
  0x85   : > { %p45_p9 = scmp.eq.s32.totalorder %s2110_s12, 0  ;;  %p50_p4 = scmp.ne.s32.totalorder %s2102_s10, %s2098_s30 }
  0x86   : > { %s2328_s29 = scalar_select %p35_p8, %s2106_s11, %s37_s28  }
  0x87   : > { %p2330_p1 = por %p45_p9, %p44_p7  ;;  %p2665_p3 = scmp.eq.s32.totalorder %s2199_s15, 0 }
  0x88   : > { %p247_p10 = scmp.eq.s32.totalorder %s2199_s15, 1  ;;  %p253_p11 = scmp.eq.s32.totalorder %s1502_s23, 1 }
  0x89   : > { %p2336_p6 = por %p2665_p3, %p50_p4  ;;  %p1733_p12 = scmp.lt.s32.totalorder %s2110_s12, 2 }
  0x8a   : > { %s2343_s14 = sand.u32 1, %s2106_s11   ;;  %p2345_p13 = por %p247_p10, %p44_p7 }
  0x8b   : > { %p2349_p0 = por %p253_p11, %p50_p4  ;;  %s1509_s20 = sshll.u32 %s2343_s14, 2 }
  0x8c   : > { %s2667_s18 = scalar_select %p2345_p13, 1, 0 }
  0x8d   : > { %s2668_s21 = scalar_select %p2349_p0, 1, 0 }
  0x8e   : > { %s1510_s2 = sshll.u32 %s2110_s12, 6  ;;  %s2669_s0 = sld [smem:[#allocation20_spill]] }
  0x8f   : > { %s336_s26 = scalar_lea.vmem [#allocation2], %s1509_s20  ;;  %p2364_p2 = pnand %p1733_p12, %p2330_p1 }
  0x90   : > { %s343_s28 = sshll.u32 %s336_s26, 4  ;;  %s1511_s17 = sshll.u32 %s2343_s14, 3  ;;  %s2360_s28 = int_to_ptr.vmem [resolvable:$true] %s343_s28 }
  0x91   : > { %s333_s27 = scalar_lea.sflag [#allocation3], %s2343_s14  ;;  %p1970_p8 = pneg %p2364_p2 }
  0x94   : > { %s2358_s23 = scalar_lea.hbm %s2669_s0, %s1510_s2  ;;  %s1973_s19 = scalar_lea.hbm %s2669_s0, 128 }
  0x95   : > { %s1968_s2 = scalar_lea.hbm %s2358_s23, 64  ;;  %p1974_p4 = scmp.lt.u32.totalorder %s2358_s23, %s2669_s0 }
  0x96   : > { %p1969_p5 = scmp.ne.s32.totalorder %s2358_s23, %s1968_s2  ;;  %p1975_p1 = scmp.lt.u32.totalorder %s1973_s19, %s1968_s2 }
  0x97   : > { %p1977_p10 = scmp.lt.u32.totalorder %s1968_s2, %s2358_s23 }
  0x98   : > { %p1971_p7 = pnand %p1970_p8, %p1969_p5  ;;  %p1976_p3 = por %p1975_p1, %p1974_p4 }
  0x9a   : > { %p1972_p9 = pneg %p1971_p7  ;;  %p1978_p11 = por %p1977_p10, %p1976_p3 }
  0x9c   : > { %p1979_p12 = pnand %p1978_p11, %p1972_p9 }
  0x9e   : > { %1982 = shalt.err (!%p1979_p12)
}
  0x9f   : > { %s1983_s4 = scalar_lea.vmem %s2360_s28, 64  ;;  %s2120_s20 = smov [#allocation2]  }
  0xa0   : > { %p1984_p5 = scmp.ne.s32.totalorder %s2360_s28, %s1983_s4  ;;  %s1988_s22 = sshll.u32 %s2120_s20, 4  ;;  %s1989_s22 = int_to_ptr.vmem [resolvable:$false] %s1988_s22 }
  0xa1   : > { %s1990_s6 = scalar_lea.vmem %s1989_s22, 128  ;;  %p1991_p13 = scmp.lt.s32.totalorder %s2360_s28, %s1989_s22 }
  0xa2   : > { %p1986_p7 = pnand %p1984_p5, %p1970_p8  ;;  %p1992_p4 = scmp.lt.s32.totalorder %s1990_s6, %s1983_s4 }
  0xa4   : > { %p1987_p0 = pneg %p1986_p7  ;;  %p1993_p1 = por %p1992_p4, %p1991_p13 }
  0xa6   : > { %p1994_p3 = pnand %p1993_p1, %p1987_p0 }
  0xa8   : > { %1997 = shalt.err (!%p1994_p3)
}
  0xa9   : > { %1721 = dma.hbm_to_vmem [thread:$0]  (!%p2364_p2), %s2358_s23, 64, %s2360_s28, %s333_s27  }
  0xaa   : > { %s354_s2 = scalar_lea.vmem [#allocation5], %s1511_s17  ;;  %s1570_s26 = sshll.u32 %s2110_s12, 7 }
  0xab   : > { %s361_s19 = sshll.u32 %s354_s2, 4  ;;  %s2404_s22 = scalar_lea.hbm %s2638_s1, %s1570_s26  ;;  %s2398_s19 = int_to_ptr.vmem [resolvable:$true] %s361_s19 }
  0xac   : > { %s2671_s6 = sand.u32 1, %s2110_s12   ;;  %s1998_s8 = scalar_lea.hbm %s2404_s22, 128 }
  0xad   : > { %s2408_s0 = scalar_lea.sflag [#allocation6], %s2671_s6  ;;  %p1999_p13 = scmp.ne.s32.totalorder %s2404_s22, %s1998_s8 }
  0xae   : > { %s2003_s23 = scalar_lea.hbm %s2638_s1, 256  ;;  %p2004_p10 = scmp.lt.u32.totalorder %s2404_s22, %s2638_s1 }
  0xaf   : > { %p2001_p0 = pnand %p1999_p13, %p1970_p8  ;;  %p2005_p11 = scmp.lt.u32.totalorder %s2003_s23, %s1998_s8 }
  0xb0   : > { %p2007_p5 = scmp.lt.u32.totalorder %s1998_s8, %s2404_s22 }
  0xb1   : > { %p2002_p9 = pneg %p2001_p0  ;;  %p2006_p12 = por %p2005_p11, %p2004_p10 }
  0xb3   : > { %p2008_p7 = por %p2007_p5, %p2006_p12 }
  0xb5   : > { %p2009_p4 = pnand %p2008_p7, %p2002_p9 }
  0xb7   : > { %2012 = shalt.err (!%p2009_p4)
}
  0xb8   : > { %s2013_s2 = scalar_lea.vmem %s2398_s19, 128  ;;  %s2121_s26 = smov [#allocation5]  }
  0xb9   : > { %p2014_p1 = scmp.ne.s32.totalorder %s2398_s19, %s2013_s2  ;;  %s2018_s20 = sshll.u32 %s2121_s26, 4  ;;  %s2019_s20 = int_to_ptr.vmem [resolvable:$false] %s2018_s20 }
  0xba   : > { %s2020_s4 = scalar_lea.vmem %s2019_s20, 256  ;;  %p2021_p0 = scmp.lt.s32.totalorder %s2398_s19, %s2019_s20 }
  0xbb   : > { %p2016_p3 = pnand %p2014_p1, %p1970_p8  ;;  %p2022_p10 = scmp.lt.s32.totalorder %s2020_s4, %s2013_s2 }
  0xbd   : > { %p2017_p13 = pneg %p2016_p3  ;;  %p2023_p11 = por %p2022_p10, %p2021_p0 }
  0xbf   : > { %p2024_p12 = pnand %p2023_p11, %p2017_p13 }
  0xc1   : > { %2027 = shalt.err (!%p2024_p12)
}
  0xc2   : > { %s2672_s8 = smov 4   ;;  %s2673_s6 = smov 64  }
  0xc3   : > { %1724 = dma.hbm_to_vmem [thread:$0]  (!%p2364_p2), %s2404_s22, 128, %s2398_s19, %s2408_s0, %s2673_s6, %s2673_s6, %s2672_s8  }
  0xc4   : > { %p2674_p8 = scmp.ne.s32.totalorder %s2657_s16, 0 }
  0xc5   : > { %s2440_s17 = sand.u32 (!%p2674_p8), 1, %s2102_s10  }
  0xc6   : > { %373 = sbr.rel (%p2674_p8) target bundleno = 3266 (0xcc2), region = 56  ;;  %s1515_s14 = sshll.u32 (!%p2674_p8), %s2440_s17, 2 }
  0xc7   : > { %s376_s23 = scalar_lea.sflag (!%p2674_p8), [#allocation3], %s2440_s17  ;;  %s379_s28 = scalar_lea.vmem (!%p2674_p8), [#allocation2], %s1515_s14 }
  0xcd   : > { %2073 = dma.done.wait (%p2336_p6), %s376_s23, 64  }
  0xce   : > { %2075 = vsyncadd (%p2336_p6), %s376_s23, 4294967232  ;;  %s384_s0 = sand.u32 1, %s2199_s15   ;;  %s1516_s16 = sshll.u32 %s2440_s17, 3 }
  0xcf   : > { %s385_s13 = scalar_lea.sflag [#allocation6], %s384_s0  ;;  %s388_s19 = scalar_lea.vmem [#allocation5], %s1516_s16 }
  0xd0   : > { %2077 = dma.done.wait (%p2336_p6), %s385_s13, 128  }
  0xd1   : > { %2079 = vsyncadd (%p2336_p6), %s385_s13, 4294967168  ;;  %p2675_p2 = scmp.eq.s32.totalorder %s2199_s15, 0 }
  0xd3   : > { %2081 = dma.done.wait (%p2675_p2), [#allocation6], 128   ;;  %p2676_p9 = pmov %p2675_p2 }
  0xd4   : > { %p2677_p5 = pmov %p2675_p2 }
  0xd5   : > { %2083 = vsyncadd (%p2676_p9), [#allocation6], 4294967168 }
  0xd6   : > { %2085 = dma.done.wait (%p2677_p5), [#allocation9], 768   ;;  %p2678_p7 = pmov %p2675_p2 }
  0xd7   : > { %p2679_p4 = pmov %p2675_p2 }
  0xd8   : > { %2087 = vsyncadd (%p2678_p7), [#allocation9], 4294966528 }
  0xd9   : > { %2089 = dma.done.wait (%p2679_p4), [#allocation12], 256   ;;  %p2680_p1 = pmov %p2675_p2 }
  0xda   : > { %vm450_vm0 = vcmask 261120   ;;  %v446_v0 = vld [vmem:[%s379_s28] sm:$0xf]  ;;  %v1572_v3 = vld [vmem:[%s388_s19] sm:$0xff]   ;;  %v2122_v15 = vmov 0.0   ;;  %vm2123_vm1 = vmmov 0  }
  0xdb   : > { %2091 = vsyncadd (%p2680_p1), [#allocation12], 4294967040  ;;  %v447_v1 = vunpack.c.l.bf16 %v446_v0  ;;  %v1573_v4 = vunpack.c.l.bf16 %v1572_v3  ;;  %v1574_v5 = vunpack.c.h.bf16 %v1572_v3  ;;  %v1784_v13 = vld [vmem:[%s2640_s3] sm:$0xff]   ;;  %1606 = vmatprep.subr.bf16.mxu0 %v2122_v15  ;;  %1614 = vmatprep.subr.bf16.mxu1 %v2122_v15  ;;  %v1786_v17 = vld [vmem:[%s2640_s3 + $0x8] sm:$0xff]   ;;  %vm677_vm2 = vcmask 1043456   ;;  %s2124_s6 = smov 64  }
  0xdc   : > { %v1785_v14 = vld [vmem:[#allocation8] sm:$0xff]   ;;  %1607 = vmatpush3.bf16.msra.mxu0 %v1784_v13  ;;  %v1787_v18 = vld [vmem:[#allocation8 + $0x8] sm:$0xff]   ;;  %1610 = vmatprep.mubr.msk.bf16.mxu0 %vm2123_vm1, %v2122_v15  ;;  %v1522_v32 = vld [vmem:[#allocation11] ss:$0 sm:$0xff]  ;;  %vm567_vm3 = vcmask 64512   ;;  %vm883_vm4 = vcmask 130048  }
  0xdd   : > { %v451_v2 = vsel %vm450_vm0, %v447_v1, 0.0  ;;  %v751_v6 = vsel %vm450_vm0, %v1573_v4, 0.0  ;;  %v754_v7 = vsel %vm450_vm0, %v1574_v5, 0.0  ;;  %1615 = vmatpush3.bf16.msra.mxu1 %v1785_v14  ;;  %1608 = vmatprep.subr.bf16.mxu0 %v2122_v15  ;;  %v1523_v34 = vld [vmem:[#allocation11 + $0x1] ss:$0 sm:$0xff]  ;;  %v1789_v39 = vld [vmem:[%s2640_s3 + $0x18] sm:$0xff]  }
  0xde   : > { %452 = vadd.xlane.f32.xlu0 %v451_v2  ;;  %752 = vadd.xlane.f32.xlu1 %v751_v6  ;;  %v1788_v37 = vld [vmem:[%s2640_s3 + $0x10] sm:$0xff]   ;;  %s2125_s28 = smov 96   ;;  %s2126_s19 = smov 32   ;;  %vm1102_vm5 = vcmask 523264  }
  0xdf   : > { %1616 = vmatprep.subr.bf16.mxu1 %v2122_v15  ;;  %1618 = vmatprep.mubr.msk.bf16.mxu1 %vm2123_vm1, %v2122_v15  ;;  %v1532_v47 = vld [vmem:[#allocation11 + $0x2] ss:$0 sm:$0xff]  ;;  %v1533_v51 = vld [vmem:[#allocation11 + $0x3] ss:$0 sm:$0xff]  ;;  %s1567_s0 = sshll.u32 %s2199_s15, 7  ;;  %s443_s13 = scalar_lea.vmem [#allocation13], %s1516_s16 }
  0xe0   : > { %1609 = vmatpush3.bf16.msra.mxu0 %v1786_v17  ;;  %s2592_s27 = scalar_lea.hbm %s2646_s9, %s1567_s0  ;;  %s1358_s15 = scalar_lea.sflag [#allocation4], %s2440_s17 }
  0xe1   : > { %1617 = vmatpush3.bf16.msra.mxu1 %v1787_v18  ;;  %p2681_p3 = scmp.ne.s32.totalorder %s2667_s18, 0  ;;  %s2127_s2 = smov [#allocation13]  }
  0xe2   : > { %755 = vadd.xlane.f32.xlu1 %v754_v7  ;;  %1628 = vmatprep.subr.bf16.mxu1 %v2122_v15  ;;  %s2032_s26 = sshll.u32 %s2127_s2, 4  ;;  %s2033_s26 = int_to_ptr.vmem [resolvable:$false] %s2032_s26 }
  0xe3   : > { %s2034_s20 = scalar_lea.vmem %s2033_s26, 256 }
 0x16b   : > { %v453_v8 = vpop.xlane.xlu0 %452  ;;  %v753_v16 = vpop.xlane.xlu1 %752 }
 0x16c   : > { %v455_v9 = vmul.f32 0.03125, %v453_v8  ;;  %v757_v20 = vmul.f32 0.03125, %v753_v16 }
 0x16e   : > { %v456_v10 = vsub.f32 %v447_v1, %v455_v9  ;;  %v759_v22 = vsub.f32 %v1573_v4, %v757_v20 }
 0x16f   : > { %v756_v19 = vpop.xlane.xlu1 %755 }
 0x170   : > { %v457_v11 = vmul.f32 %v456_v10, %v456_v10  ;;  %v758_v21 = vmul.f32 0.03125, %v756_v19  ;;  %v761_v25 = vmul.f32 %v759_v22, %v759_v22 }
 0x172   : > { %v458_v12 = vsel %vm450_vm0, %v457_v11, 0.0  ;;  %v760_v23 = vsub.f32 %v1574_v5, %v758_v21  ;;  %v763_v27 = vsel %vm450_vm0, %v761_v25, 0.0 }
 0x173   : > { %459 = vadd.xlane.f32.xlu0 %v458_v12 }
 0x174   : > { %v762_v24 = vmul.f32 %v760_v23, %v760_v23 }
 0x176   : > { %v766_v26 = vsel %vm450_vm0, %v762_v24, 0.0 }
 0x177   : > { %767 = vadd.xlane.f32.xlu1 %v766_v26  ;;  %764 = vadd.xlane.f32.xlu0 %v763_v27 }
 0x200   : > { %v460_v28 = vpop.xlane.xlu0 %459 }
 0x201   : > { %v461_v29 = vmul.f32 0.03125, %v460_v28 }
 0x203   : > { %v462_v30 = vadd.f32 1e-05, %v461_v29 }
 0x204   : > { %v768_v40 = vpop.xlane.xlu1 %767  ;;  %v765_v41 = vpop.xlane.xlu0 %764 }
 0x205   : > { %1802 = vrsqrt.f32 %v462_v30  ;;  %v770_v42 = vmul.f32 0.03125, %v768_v40  ;;  %v769_v43 = vmul.f32 0.03125, %v765_v41 }
 0x207   : > { %v772_v44 = vadd.f32 1e-05, %v770_v42  ;;  %v771_v45 = vadd.f32 1e-05, %v769_v43 }
 0x209   : > { %1804 = vrsqrt.f32 %v772_v44 }
 0x20a   : > { %1806 = vrsqrt.f32 %v771_v45 }
 0x20f   : > { %v1803_v31 = vpop.eup %1802 }
 0x210   : > { %v464_v33 = vmul.f32 %v1803_v31, %v456_v10 }
 0x212   : > { %v469_v35 = vmul.f32 %v1522_v32, %v464_v33 }
 0x213   : > { %v1805_v46 = vpop.eup %1804 }
 0x214   : > { %v474_v36 = vadd.f32 %v1523_v34, %v469_v35  ;;  %v1807_v48 = vpop.eup %1806  ;;  %v776_v49 = vmul.f32 %v1805_v46, %v760_v23 }
 0x215   : > { %v775_v50 = vmul.f32 %v1807_v48, %v759_v22 }
 0x216   : > { %v475_v38 = vpack.c.bf16 %v474_v36, %v474_v36  ;;  %v782_v52 = vmul.f32 %v1532_v47, %v776_v49  ;;  %v1790_v49 = vld [vmem:[#allocation8 + $0x10] sm:$0xff]  }
 0x217   : > { %v781_v53 = vmul.f32 %v1532_v47, %v775_v50 }
 0x218   : > { %1611 = vmatmul.mubr.msk.bf16.vlgmr.msra.gmra.mrb[0].mxu0 %vm450_vm0, %v475_v38  ;;  %1619 = vmatmul.mubr.msk.bf16.vlgmr.msra.gmra.mrb[0].mxu1 %vm450_vm0, %v475_v38  ;;  %v788_v54 = vadd.f32 %v1533_v51, %v782_v52 }
 0x219   : > { %1629 = vmatpush3.bf16.msra.mxu1 %v1788_v37  ;;  %1632 = vmatprep.mubr.msk.bf16.mxu1 %vm2123_vm1, %v2122_v15  ;;  %v787_v55 = vadd.f32 %v1533_v51, %v781_v53  ;;  %v1791_v51 = vld [vmem:[#allocation8 + $0x18] sm:$0xff]  }
 0x21a   : > { %1630 = vmatprep.subr.bf16.mxu1 %v2122_v15 }
 0x21b   : > { %v2500_v56 = vpack.c.bf16 %v788_v54, %v787_v55 }
 0x21d   : > { %1631 = vmatpush3.bf16.msra.mxu1 %v1789_v39 }
 0x220   : > { %1633 = vmatmul.mubr.msk.bf16.vlgmr.msra.gmra.mrb[4].mxu1 %vm450_vm0, %v2500_v56 }
 0x2eb   : > { %v529_v57 = vpop.f32.mrb[0].mxu0  ;;  %v662_v58 = vpop.f32.mrb[0].mxu1 }
 0x2ec   : > { %v668_v59 = vpack.c.bf16 %v662_v58, %v662_v58  ;;  %v1620_v60 = vpop.f32.mrb[1].mxu1  ;;  %535 = vxpose.xlu0.b32.start.end [1/1] (short) (narrow) %v529_v57, 32  ;;  %v1612_v61 = vpop.f32.mrb[1].mxu0 }
 0x2ed   : > { %v532_v62 = vpop.f32.mrb[2].mxu0  ;;  %v665_v63 = vpop.f32.mrb[2].mxu1 }
 0x2ee   : > { %v679_v0 = vsel %vm677_vm2, %v668_v59, 0  ;;  %v1613_v1 = vpop.f32.mrb[3].mxu0  ;;  %v1621_v2 = vpop.f32.mrb[3].mxu1  ;;  %1682 = vmatprep.subr.msk.bf16.mxu0 %vm677_vm2, %v668_v59 }
 0x2ef   : > { %1623 = vmatpush3.bf16.msra.mxu0 %v679_v0 }
 0x2f0   : > { %1636 = vmatprep.subr.bf16.mxu0 %v2122_v15 }
 0x2f3   : > { %v844_v3 = vpop.f32.mrb[4].mxu1 }
 0x2f4   : > { %v1634_v4 = vpop.f32.mrb[5].mxu1 }
 0x2f5   : > { %v847_v5 = vpop.f32.mrb[6].mxu1 }
 0x2f6   : > { %v1635_v6 = vpop.f32.mrb[7].mxu1 }
 0x36c   : > { %v551_v7 = vpop.trf.xlu0 }
 0x36d   : > { %v568_v8 = vsel %vm567_vm3, %v551_v7, -inf }
 0x36e   : > { %569 = vmax.xlane.f32.xlu1 %v568_v8 }
 0x370   : > { %v552_v9 = vpop.trf.xlu0 }
 0x371   : > { %v571_v10 = vsel %vm567_vm3, %v552_v9, -inf }
 0x372   : > { %572 = vmax.xlane.f32.xlu1 %v571_v10 }
 0x374   : > { %v553_v11 = vpop.trf.xlu0 }
 0x375   : > { %v574_v12 = vsel %vm567_vm3, %v553_v11, -inf }
 0x376   : > { %575 = vmax.xlane.f32.xlu1 %v574_v12 }
 0x378   : > { %v554_v13 = vpop.trf.xlu0 }
 0x379   : > { %v577_v14 = vsel %vm567_vm3, %v554_v13, -inf }
 0x37a   : > { %578 = vmax.xlane.f32.xlu1 %v577_v14 }
 0x3fb   : > { %v570_v16 = vpop.xlane.xlu1 %569 }
 0x3fc   : > { %v580_v17 = vsub.f32 %v551_v7, %v570_v16 }
 0x3fe   : > { %v584_v18 = vmul.f32 1.442695, %v580_v17 }
 0x3ff   : > { %v573_v19 = vpop.xlane.xlu1 %572 }
 0x400   : > { %1808 = vpow2.f32 %v584_v18  ;;  %v581_v20 = vsub.f32 %v552_v9, %v573_v19 }
 0x402   : > { %v586_v21 = vmul.f32 1.442695, %v581_v20 }
 0x403   : > { %v576_v22 = vpop.xlane.xlu1 %575 }
 0x404   : > { %1810 = vpow2.f32 %v586_v21  ;;  %v582_v23 = vsub.f32 %v553_v11, %v576_v22 }
 0x406   : > { %v588_v24 = vmul.f32 1.442695, %v582_v23 }
 0x407   : > { %v579_v25 = vpop.xlane.xlu1 %578 }
 0x408   : > { %1812 = vpow2.f32 %v588_v24  ;;  %v583_v26 = vsub.f32 %v554_v13, %v579_v25 }
 0x40a   : > { %v1809_v27 = vpop.eup %1808  ;;  %v590_v28 = vmul.f32 1.442695, %v583_v26 }
 0x40b   : > { %v592_v29 = vsel %vm567_vm3, %v1809_v27, 0.0 }
 0x40c   : > { %1814 = vpow2.f32 %v590_v28  ;;  %593 = vadd.xlane.f32.xlu1 %v592_v29 }
 0x40e   : > { %v1811_v30 = vpop.eup %1810 }
 0x40f   : > { %v595_v31 = vsel %vm567_vm3, %v1811_v30, 0.0 }
 0x410   : > { %596 = vadd.xlane.f32.xlu1 %v595_v31 }
 0x412   : > { %v1813_v32 = vpop.eup %1812 }
 0x413   : > { %v598_v33 = vsel %vm567_vm3, %v1813_v32, 0.0 }
 0x414   : > { %599 = vadd.xlane.f32.xlu1 %v598_v33 }
 0x416   : > { %v1815_v34 = vpop.eup %1814 }
 0x417   : > { %v601_v35 = vsel %vm567_vm3, %v1815_v34, 0.0 }
 0x418   : > { %602 = vadd.xlane.f32.xlu1 %v601_v35 }
 0x44b   : > { %851 = vxpose.xlu1.b32.start [1/2] (short) (narrow) %v844_v3, 32 }
 0x44f   : > { %852 = vxpose.xlu1.b32.end [2/2] (short) (narrow) %v847_v5, 32 }
 0x499   : > { %v594_v36 = vpop.xlane.xlu1 %593 }
 0x49a   : > { %1816 = vrcp.f32 %v594_v36 }
 0x49d   : > { %v597_v37 = vpop.xlane.xlu1 %596 }
 0x49e   : > { %1818 = vrcp.f32 %v597_v37 }
 0x4a1   : > { %v600_v38 = vpop.xlane.xlu1 %599 }
 0x4a2   : > { %1820 = vrcp.f32 %v600_v38 }
 0x4a4   : > { %v1817_v40 = vpop.eup %1816 }
 0x4a5   : > { %v603_v39 = vpop.xlane.xlu1 %602  ;;  %v608_v42 = vmul.f32 %v1817_v40, %v1809_v27 }
 0x4a6   : > { %1822 = vrcp.f32 %v603_v39 }
 0x4a8   : > { %v1819_v41 = vpop.eup %1818 }
 0x4a9   : > { %v609_v43 = vmul.f32 %v1819_v41, %v1811_v30 }
 0x4ab   : > { %v669_v44 = vpack.c.bf16 %v609_v43, %v608_v42 }
 0x4ac   : > { %v1821_v45 = vpop.eup %1820 }
 0x4ad   : > { %1624 = vmatprep.mubr.msk.bf16.mxu0 %vm567_vm3, %v669_v44  ;;  %v610_v47 = vmul.f32 %v1821_v45, %v1813_v32  ;;  %v1792_v44 = vld [vmem:[%s2642_s5] sm:$0xff]   ;;  %v1793_v45 = vld [vmem:[%s2642_s5 + $0x8] sm:$0xff]  }
 0x4b0   : > { %v1823_v46 = vpop.eup %1822 }
 0x4b1   : > { %v611_v48 = vmul.f32 %v1823_v46, %v1815_v34  ;;  %v1794_v46 = vld [vmem:[%s2642_s5 + $0x10] sm:$0xff]  }
 0x4b3   : > { %v670_v50 = vpack.c.bf16 %v611_v48, %v610_v47  ;;  %v1795_v47 = vld [vmem:[%s2642_s5 + $0x18] sm:$0xff]  }
 0x4b5   : > { %1625 = vmatmul.mubr.msk.bf16.vlgmr.msra.gmra.mrb[4].mxu0 %vm567_vm3, %v670_v50 }
 0x4b6   : > { %1637 = vmatpush3.bf16.msra.mxu0 %v1790_v49  ;;  %1640 = vmatprep.mubr.msk.bf16.mxu0 %vm2123_vm1, %v2122_v15 }
 0x4b7   : > { %1638 = vmatprep.subr.bf16.mxu0 %v2122_v15 }
 0x4ba   : > { %1639 = vmatpush3.bf16.msra.mxu0 %v1791_v51 }
 0x4bb   : > { %1650 = vmatprep.subr.bf16.mxu0 %v2122_v15 }
 0x4bd   : > { %1641 = vmatmul.mubr.msk.bf16.vlgmr.msra.gmra.mrb[8].mxu0 %vm450_vm0, %v2500_v56 }
 0x4be   : > { %1658 = vmatprep.mubr.msk.bf16.mxu0 %vm2123_vm1, %v2122_v15  ;;  %1651 = vmatpush3.bf16.msra.mxu0 %v1792_v44  ;;  %v1798_v44 = vld [vmem:[%s2644_s7] sm:$0xff]  }
 0x4bf   : > { %1652 = vmatprep.subr.bf16.mxu0 %v2122_v15 }
 0x4c2   : > { %1653 = vmatpush3.bf16.msra.mxu0 %v1793_v45  ;;  %v1799_v45 = vld [vmem:[%s2644_s7 + $0x8] sm:$0xff]  }
 0x4c3   : > { %1654 = vmatprep.subr.bf16.mxu0 %v2122_v15 }
 0x4c6   : > { %1655 = vmatpush3.bf16.msra.mxu0 %v1794_v46  ;;  %v1800_v46 = vld [vmem:[%s2644_s7 + $0x10] sm:$0xff]  }
 0x4c7   : > { %1656 = vmatprep.subr.bf16.mxu0 %v2122_v15 }
 0x4ca   : > { %1657 = vmatpush3.bf16.msra.mxu0 %v1795_v47  ;;  %v1801_v47 = vld [vmem:[%s2644_s7 + $0x18] sm:$0xff]  }
 0x4cb   : > { %v867_v52 = vpop.trf.xlu1 }
 0x4cc   : > { %v884_v53 = vsel %vm883_vm4, %v867_v52, -inf }
 0x4cd   : > { %885 = vmax.xlane.f32.xlu0 %v884_v53 }
 0x4cf   : > { %v868_v54 = vpop.trf.xlu1 }
 0x4d0   : > { %v887_v55 = vsel %vm883_vm4, %v868_v54, -inf }
 0x4d1   : > { %888 = vmax.xlane.f32.xlu1 %v887_v55 }
 0x4d3   : > { %v869_v57 = vpop.trf.xlu1 }
 0x4d4   : > { %v890_v58 = vsel %vm883_vm4, %v869_v57, -inf }
 0x4d5   : > { %891 = vmax.xlane.f32.xlu0 %v890_v58 }
 0x4d7   : > { %v870_v59 = vpop.trf.xlu1 }
 0x4d8   : > { %v893_v60 = vsel %vm883_vm4, %v870_v59, -inf }
 0x4d9   : > { %894 = vmax.xlane.f32.xlu0 %v893_v60 }
 0x55a   : > { %v886_v56 = vpop.xlane.xlu0 %885 }
 0x55b   : > { %v896_v61 = vsub.f32 %v867_v52, %v886_v56 }
 0x55d   : > { %v900_v62 = vmul.f32 1.442695, %v896_v61 }
 0x55e   : > { %v889_v63 = vpop.xlane.xlu1 %888 }
 0x55f   : > { %1824 = vpow2.f32 %v900_v62  ;;  %v897_v0 = vsub.f32 %v868_v54, %v889_v63  ;;  %v1546_v63 = vld [vmem:[#allocation11 + $0x6] ss:$0 sm:$0xff] }
 0x561   : > { %v902_v1 = vmul.f32 1.442695, %v897_v0 }
 0x562   : > { %v892_v2 = vpop.xlane.xlu0 %891 }
 0x563   : > { %1826 = vpow2.f32 %v902_v1  ;;  %v898_v3 = vsub.f32 %v869_v57, %v892_v2 }
 0x565   : > { %v904_v4 = vmul.f32 1.442695, %v898_v3 }
 0x566   : > { %v895_v5 = vpop.xlane.xlu0 %894 }
 0x567   : > { %1828 = vpow2.f32 %v904_v4  ;;  %v899_v6 = vsub.f32 %v870_v59, %v895_v5 }
 0x569   : > { %v1825_v7 = vpop.eup %1824  ;;  %v906_v8 = vmul.f32 1.442695, %v899_v6 }
 0x56a   : > { %v908_v9 = vsel %vm883_vm4, %v1825_v7, 0.0 }
 0x56b   : > { %1830 = vpow2.f32 %v906_v8  ;;  %909 = vadd.xlane.f32.xlu0 %v908_v9 }
 0x56d   : > { %v1827_v10 = vpop.eup %1826 }
 0x56e   : > { %v911_v11 = vsel %vm883_vm4, %v1827_v10, 0.0 }
 0x56f   : > { %912 = vadd.xlane.f32.xlu0 %v911_v11 }
 0x571   : > { %v1829_v12 = vpop.eup %1828 }
 0x572   : > { %v914_v13 = vsel %vm883_vm4, %v1829_v12, 0.0 }
 0x573   : > { %915 = vadd.xlane.f32.xlu0 %v914_v13 }
 0x575   : > { %v1831_v14 = vpop.eup %1830 }
 0x576   : > { %v917_v16 = vsel %vm883_vm4, %v1831_v14, 0.0 }
 0x577   : > { %918 = vadd.xlane.f32.xlu0 %v917_v16  ;;  %v1163_v16 = vld [vmem:[#allocation7] sm:$0xff] }
 0x588   : > { %v1626_v17 = vpop.f32.mrb[4].mxu0 }
 0x589   : > { %v2531_v18 = vpop.f32.mrb[5].mxu0 }
 0x58a   : > { %v1627_v19 = vpop.f32.mrb[6].mxu0 }
 0x58b   : > { %v718_v20 = vpop.f32.mrb[7].mxu0 }
 0x590   : > { %v979_v21 = vpop.f32.mrb[8].mxu0 }
 0x591   : > { %v1642_v22 = vpop.f32.mrb[9].mxu0 }
 0x592   : > { %v982_v23 = vpop.f32.mrb[10].mxu0 }
 0x593   : > { %v986_v24 = vpack.c.bf16 %v982_v23, %v979_v21  ;;  %v1643_v25 = vpop.f32.mrb[11].mxu0 }
 0x595   : > { %1644 = vmatprep.subr.bf16.mxu1 %v986_v24 }
 0x596   : > { %1645 = vmatpush3.bf16.msra.mxu1 %v986_v24 }
 0x597   : > { %1662 = vmatprep.subr.bf16.mxu1 %v2122_v15 }
 0x5f8   : > { %v910_v26 = vpop.xlane.xlu0 %909 }
 0x5f9   : > { %1832 = vrcp.f32 %v910_v26 }
 0x5fc   : > { %v913_v27 = vpop.xlane.xlu0 %912 }
 0x5fd   : > { %1834 = vrcp.f32 %v913_v27 }
 0x600   : > { %v916_v28 = vpop.xlane.xlu0 %915 }
 0x601   : > { %1836 = vrcp.f32 %v916_v28 }
 0x603   : > { %v1833_v30 = vpop.eup %1832 }
 0x604   : > { %v919_v29 = vpop.xlane.xlu0 %918  ;;  %v924_v32 = vmul.f32 %v1833_v30, %v1825_v7 }
 0x605   : > { %1838 = vrcp.f32 %v919_v29 }
 0x607   : > { %v1835_v31 = vpop.eup %1834 }
 0x608   : > { %v925_v33 = vmul.f32 %v1835_v31, %v1827_v10 }
 0x60a   : > { %v987_v34 = vpack.c.bf16 %v925_v33, %v924_v32  ;;  %v1796_v32 = vld [vmem:[#allocation10] sm:$0xff]   ;;  %v1797_v33 = vld [vmem:[#allocation10 + $0x8] sm:$0xff]  }
 0x60b   : > { %v1837_v35 = vpop.eup %1836 }
 0x60c   : > { %1646 = vmatprep.mubr.msk.bf16.mxu1 %vm883_vm4, %v987_v34  ;;  %v926_v37 = vmul.f32 %v1837_v35, %v1829_v12 }
 0x60f   : > { %v1839_v36 = vpop.eup %1838 }
 0x610   : > { %v927_v38 = vmul.f32 %v1839_v36, %v1831_v14 }
 0x612   : > { %v988_v39 = vpack.c.bf16 %v927_v38, %v926_v37  ;;  %v1554_v38 = vld [vmem:[#allocation11 + $0x4] ss:$0 sm:$0xff] }
 0x614   : > { %1647 = vmatmul.mubr.msk.bf16.vlgmr.msra.gmra.mrb[8].mxu1 %vm883_vm4, %v988_v39 }
 0x615   : > { %1666 = vmatprep.mubr.msk.bf16.mxu1 %vm2123_vm1, %v2122_v15  ;;  %1663 = vmatpush3.bf16.msra.mxu1 %v1796_v32 }
 0x616   : > { %1664 = vmatprep.subr.bf16.mxu1 %v2122_v15 }
 0x619   : > { %1665 = vmatpush3.bf16.msra.mxu1 %v1797_v33 }
 0x61a   : > { %1670 = vmatprep.subr.bf16.mxu1 %v2122_v15 }
 0x6e7   : > { %v1648_v40 = vpop.f32.mrb[8].mxu1 }
 0x6e8   : > { %1050 = vrot.lane.b32.xlu1 %v1648_v40, %s2124_s6  ;;  %v1029_v41 = vpop.f32.mrb[9].mxu1  ;;  %v1555_v40 = vld [vmem:[#allocation11 + $0x5] ss:$0 sm:$0xff] }
 0x6e9   : > { %v1649_v42 = vpop.f32.mrb[10].mxu1 }
 0x6ea   : > { %v1032_v43 = vpop.f32.mrb[11].mxu1 }
 0x6eb   : > { %1045 = vrot.lane.b32.xlu0 %v1032_v43, %s2125_s28 }
 0x6ec   : > { %731 = vrot.lane.b32.xlu1 %v718_v20, %s2125_s28 }
 0x6ef   : > { %1055 = vrot.lane.b32.xlu0 %v1649_v42, %s2126_s19 }
 0x6f0   : > { %741 = vrot.lane.b32.xlu1 %v1627_v19, %s2126_s19 }
 0x6f3   : > { %736 = vrot.lane.b32.xlu0 %v1626_v17, %s2124_s6 }
 0x75a   : > { %v1051_v50 = vpop.permute.xlu1 %1050 }
 0x75d   : > { %v1046_v48 = vpop.permute.xlu0 %1045 }
 0x75e   : > { %v1048_v49 = vadd.f32 %v1046_v48, %v1029_v41  ;;  %v732_v54 = vpop.permute.xlu1 %731  ;;  %v1556_v48 = vld [vmem:[#allocation11 + $0x7] ss:$0 sm:$0xff] }
 0x75f   : > { %v734_v57 = vadd.f32 %v732_v54, %v2531_v18 }
 0x760   : > { %v1053_v51 = vadd.f32 %v1051_v50, %v1048_v49 }
 0x761   : > { %v1056_v52 = vpop.permute.xlu0 %1055 }
 0x762   : > { %v1058_v53 = vadd.f32 %v1056_v52, %v1053_v51  ;;  %v742_v59 = vpop.permute.xlu1 %741 }
 0x764   : > { %1060 = vrot.lane.b32.xlu0 %v1058_v53, %s2126_s19  ;;  %s1371_s19 = sshll.u32 %s443_s13, 4  ;;  %s2594_s19 = int_to_ptr.vmem [resolvable:$true] %s1371_s19 }
 0x765   : > { %v737_v55 = vpop.permute.xlu0 %736  ;;  %s2028_s16 = scalar_lea.vmem %s2594_s19, 128  ;;  %p2035_p10 = scmp.lt.s32.totalorder %s2594_s19, %s2033_s26 }
 0x766   : > { %v739_v58 = vadd.f32 %v737_v55, %v734_v57  ;;  %p2029_p6 = scmp.ne.s32.totalorder %s2594_s19, %s2028_s16  ;;  %p2036_p11 = scmp.lt.s32.totalorder %s2034_s20, %s2028_s16 }
 0x768   : > { %v744_v60 = vadd.f32 %v742_v59, %v739_v58  ;;  %p2030_p13 = pnand %p2029_p6, %p2681_p3  ;;  %p2037_p12 = por %p2036_p11, %p2035_p10 }
 0x76a   : > { %p2031_p0 = pneg %p2030_p13 }
 0x76c   : > { %p2038_p8 = pnand %p2037_p12, %p2031_p0 }
 0x7d6   : > { %v1061_v56 = vpop.permute.xlu0 %1060 }
 0x7d7   : > { %v1063_v61 = vsel %vm450_vm0, %v744_v60, %v1061_v56 }
 0x7d8   : > { %v1064_v62 = vpack.c.bf16 %v1063_v61, %v1063_v61 }
 0x7da   : > { %1659 = vmatmul.mubr.msk.bf16.vlgmr.msra.gmra.mrb[12].mxu0 %vm1102_vm5, %v1064_v62 }
 0x8ad   : > { %v1140_v0 = vpop.f32.mrb[12].mxu0 }
 0x8ae   : > { %v1141_v1 = vadd.f32 %v1546_v63, %v1140_v0  ;;  %v1660_v2 = vpop.f32.mrb[13].mxu0 }
 0x8af   : > { %v1143_v3 = vpop.f32.mrb[14].mxu0 }
 0x8b0   : > { %v1552_v4 = vmul.f32 -1.442695, %v1141_v1  ;;  %1153 = vrot.lane.b32.xlu1 %v1141_v1, %s2124_s6  ;;  %v1661_v5 = vpop.f32.mrb[15].mxu0 }
 0x8b2   : > { %1840 = vpow2.f32 %v1552_v4 }
 0x8bc   : > { %v1841_v6 = vpop.eup %1840 }
 0x8bd   : > { %v1149_v7 = vadd.f32 1.0, %v1841_v6 }
 0x8bf   : > { %1842 = vrcp.f32 %v1149_v7 }
 0x8c9   : > { %v1843_v8 = vpop.eup %1842 }
 0x8ca   : > { %1174 = vrot.lane.b32.xlu1 %v1843_v8, %s2124_s6 }
 0x922   : > { %v1154_v9 = vpop.permute.xlu1 %1153 }
 0x923   : > { %v1156_v10 = vadd.f32 %v1154_v9, %v1141_v1 }
 0x925   : > { %v1553_v11 = vmul.f32 -1.442695, %v1156_v10 }
 0x927   : > { %1844 = vpow2.f32 %v1553_v11 }
 0x931   : > { %v1845_v12 = vpop.eup %1844 }
 0x932   : > { %v1160_v13 = vadd.f32 1.0, %v1845_v12 }
 0x934   : > { %1846 = vrcp.f32 %v1160_v13 }
 0x935   : > { %1848 = vtanh.f32 %v744_v60  ;;  %v1560_v60 = vld [vmem:[#allocation11 + $0x8] ss:$0 sm:$0xff] }
 0x936   : > { %1850 = vtanh.f32 %v1058_v53 }
 0x93c   : > { %v1175_v18 = vpop.permute.xlu1 %1174 }
 0x93e   : > { %v1847_v14 = vpop.eup %1846 }
 0x93f   : > { %1165 = vrot.lane.b32.xlu0 %v1847_v14, %s2125_s28  ;;  %v1849_v17 = vpop.eup %1848 }
 0x940   : > { %v1170_v21 = vmul.f32 %v1849_v17, %v1843_v8  ;;  %v1851_v22 = vpop.eup %1850 }
 0x941   : > { %v1177_v23 = vmul.f32 %v1851_v22, %v1175_v18 }
 0x9b1   : > { %v1166_v19 = vpop.permute.xlu0 %1165 }
 0x9b2   : > { %v1168_v20 = vmul.f32 %v1166_v19, %v1163_v16 }
 0x9b4   : > { %v1171_v24 = vadd.f32 %v1170_v21, %v1168_v20 }
 0x9b6   : > { %v1178_v25 = vadd.f32 %v1177_v23, %v1171_v24 }
 0x9b8   : > { %v1181_v26 = vsel %vm450_vm0, %v1178_v25, 0.0 }
 0x9b9   : > { %1182 = vadd.xlane.f32.xlu0 %v1181_v26 }
 0xa46   : > { %v1183_v27 = vpop.xlane.xlu0 %1182 }
 0xa47   : > { %v1184_v28 = vmul.f32 0.03125, %v1183_v27 }
 0xa49   : > { %v1185_v29 = vsub.f32 %v1178_v25, %v1184_v28 }
 0xa4b   : > { %v1186_v30 = vmul.f32 %v1185_v29, %v1185_v29 }
 0xa4d   : > { %v1187_v31 = vsel %vm450_vm0, %v1186_v30, 0.0 }
 0xa4e   : > { %1188 = vadd.xlane.f32.xlu1 %v1187_v31 }
 0xadb   : > { %v1189_v34 = vpop.xlane.xlu1 %1188 }
 0xadc   : > { %v1190_v35 = vmul.f32 0.03125, %v1189_v34 }
 0xade   : > { %v1191_v36 = vadd.f32 1e-05, %v1190_v35 }
 0xae0   : > { %1852 = vrsqrt.f32 %v1191_v36 }
 0xaea   : > { %v1853_v37 = vpop.eup %1852 }
 0xaeb   : > { %v1193_v39 = vmul.f32 %v1853_v37, %v1185_v29 }
 0xaed   : > { %v1198_v41 = vmul.f32 %v1554_v38, %v1193_v39 }
 0xaef   : > { %v1203_v42 = vadd.f32 %v1555_v40, %v1198_v41 }
 0xaf1   : > { %v1204_v43 = vpack.c.bf16 %v1203_v42, %v1203_v42 }
 0xaf3   : > { %1667 = vmatmul.mubr.msk.bf16.vlgmr.msra.gmra.mrb[12].mxu1 %vm450_vm0, %v1204_v43 }
 0xaf4   : > { %1678 = vmatprep.mubr.msk.bf16.mxu1 %vm2123_vm1, %v2122_v15  ;;  %1671 = vmatpush3.bf16.msra.mxu1 %v1798_v44 }
 0xaf5   : > { %1672 = vmatprep.subr.bf16.mxu1 %v2122_v15 }
 0xaf8   : > { %1673 = vmatpush3.bf16.msra.mxu1 %v1799_v45 }
 0xaf9   : > { %1674 = vmatprep.subr.bf16.mxu1 %v2122_v15 }
 0xafc   : > { %1675 = vmatpush3.bf16.msra.mxu1 %v1800_v46 }
 0xafd   : > { %1676 = vmatprep.subr.bf16.mxu1 %v2122_v15 }
 0xb00   : > { %1677 = vmatpush3.bf16.msra.mxu1 %v1801_v47 }
 0xbc6   : > { %v1263_v49 = vpop.f32.mrb[12].mxu1 }
 0xbc7   : > { %v1264_v50 = vadd.f32 %v1556_v48, %v1263_v49  ;;  %v1668_v51 = vpop.f32.mrb[13].mxu1 }
 0xbc8   : > { %v1266_v52 = vpop.f32.mrb[14].mxu1 }
 0xbc9   : > { %v1270_v53 = vmul.f32 0.70710677, %v1264_v50  ;;  %v1669_v54 = vpop.f32.mrb[15].mxu1  ;;  %v1269_v57 = vmul.f32 0.5, %v1264_v50 }
 0xbcb   : > { %1854 = verf.f32 %v1270_v53 }
 0xbd5   : > { %v1855_v55 = vpop.eup %1854 }
 0xbd6   : > { %v1272_v58 = vadd.f32 1.0, %v1855_v55 }
 0xbd8   : > { %v1273_v59 = vmul.f32 %v1272_v58, %v1269_v57 }
 0xbda   : > { %v1274_v15 = vpack.c.bf16 %v1273_v59, %v1273_v59 }
 0xbdc   : > { %1679 = vmatmul.mubr.msk.bf16.vlgmr.msra.gmra.mrb[16].mxu1 %vm1102_vm5, %v1274_v15 }
 0xcaf   : > { %v1349_v56 = vpop.f32.mrb[16].mxu1 }
 0xcb0   : > { %v1350_v61 = vadd.f32 %v1560_v60, %v1349_v56  ;;  %v1680_v62 = vpop.f32.mrb[17].mxu1 }
 0xcb1   : > { %v1352_v63 = vpop.f32.mrb[18].mxu1 }
 0xcb2   : > { %v1355_v0 = vadd.f32 %v1350_v61, %v1178_v25  ;;  %v1681_v1 = vpop.f32.mrb[19].mxu1 }
 0xcb4   : > { %1356 = vst.msk [vmem:[%s443_s13] sm:$0xff] %vm450_vm0, %v1355_v0 }
 0xcb5   : > { %2041 = shalt.err (!%p2038_p8)
}
 0xcb6   : > { %s2042_s17 = scalar_lea.hbm %s2592_s27, 128  ;;  %s2046_s6 = scalar_lea.hbm %s2646_s9, 256 }
 0xcb7   : > { %p2043_p2 = scmp.ne.s32.totalorder %s2592_s27, %s2042_s17  ;;  %p2047_p7 = scmp.lt.u32.totalorder %s2592_s27, %s2646_s9 }
 0xcb8   : > { %p2048_p4 = scmp.lt.u32.totalorder %s2046_s6, %s2042_s17  ;;  %p2050_p6 = scmp.lt.u32.totalorder %s2042_s17, %s2592_s27 }
 0xcb9   : > { %p2044_p9 = pnand %p2043_p2, %p2681_p3 }
 0xcba   : > { %p2049_p1 = por %p2048_p4, %p2047_p7 }
 0xcbb   : > { %p2045_p5 = pneg %p2044_p9 }
 0xcbc   : > { %p2051_p13 = por %p2050_p6, %p2049_p1 }
 0xcbe   : > { %p2052_p0 = pnand %p2051_p13, %p2045_p5 }
 0xcc0   : > { %2055 = shalt.err (!%p2052_p0)
}
 0xcc1   : > { %1703 = dma.vmem_to_hbm [thread:$0]  (%p2681_p3), %s2594_s19, 128, %s2592_s27, %s1358_s15  }
 0xcc2 PF: > { %s1383_s28 = sand.u32 1, %s2098_s30   ;;  %p2682_p10 = scmp.ne.s32.totalorder %s2668_s21, 0 }
 0xcc3   : > { %p2683_p11 = scmp.ge.s32.totalorder %s2110_s12, 2  ;;  %s1384_s0 = scalar_lea.sflag [#allocation4], %s1383_s28 }
 0xcc5   : > { %p1726_p12 = pnand %p2683_p11, %p2682_p10 }
 0xcc7   : > { %2093 = dma.done.wait (!%p1726_p12), %s1384_s0, 128  }
 0xcc8   : > { %2095 = vsyncadd (!%p1726_p12), %s1384_s0, 4294967168  ;;  %p27_p8 = scmp.ge.s32.totalorder %s2317_s25, 4   ;;  %s2684_s30 = smov %s2102_s10 }
 0xcc9   : > { %s2685_s10 = smov %s2106_s11  ;;  %s2686_s11 = smov %s2328_s29 }
 0xcca   : > { %s2687_s12 = smov %s2317_s25  ;;  %29 = sbr.rel (!%p27_p8) target bundleno = 15 (0xf), region = 132 }
 0xcd1   :  { %1389 = vsyncpa [#allocation3], 1 }
 0xcd2   :  { %1391 = vsyncpa [#allocation3 + $0x1], 1 }
 0xcd3   :  { %1392 = vsyncpa [#allocation6], 1 }
 0xcd4   :  { %1394 = vsyncpa [#allocation6 + $0x1], 1 }
 0xcd5   :  { %1395 = vsyncpa [#allocation9], 1 }
 0xcd6   :  { %1396 = vsyncpa [#allocation12], 1 }
 0xcd7   :  { %1397 = vsyncpa [#allocation4], 1 }
 0xcd8   :  { %1399 = vsyncpa [#allocation4 + $0x1], 1 }

</bundles_post_ra>
